<compile_context>
chip_gen: v7x
topology: tpu7x:2x2x1
jax: 0.10.0
libtpu: 0.0.40
codegen_flags: <defaults>
</compile_context>

<pallas_src>
import math

import numpy as np
import jax
import jax.numpy as jnp
from jax.experimental import pallas as pl
from jax.experimental.pallas import tpu as pltpu


def multilayer_gcn_kernel(adj_ref, x_ref, w_ref, o_ref):
    # adj_ref: (Bt, N, N)   raw adjacencies for the Bt graphs of this grid step
    # x_ref:   (Bt*N, D)    node features, graphs stacked along rows
    # w_ref:   (L, D, D)    stacked layer weights (same block every grid step)
    # o_ref:   (Bt*N, D)    output node features (also reused as the layer buffer)
    bt, n, _ = adj_ref.shape
    num_layers = w_ref.shape[0]

    # Per-graph structure, computed once per grid step and reused by all layers:
    # transposed adjacency (bf16 for the MXU) and d = (colsum(A) + 1)^-1/2
    # (the +1 is the A + I_n term, folded analytically instead of materializing eye).
    at_bf = []
    d_col = []
    for b in range(bt):
        a_t = adj_ref[b].astype(jnp.float32).T                           # A^T, (N, N)
        # row-sum of A^T == column-sum of A (torch A.sum(1) on batched A)
        d = jax.lax.rsqrt(jnp.sum(a_t, axis=1, keepdims=True) + 1.0)     # (N, 1)
        at_bf.append(a_t.astype(jnp.bfloat16))
        d_col.append(d)

    cur = x_ref[...].astype(jnp.float32)                                 # (Bt*N, D)
    for l in range(num_layers):                                          # static unroll
        w_bf = w_ref[l].astype(jnp.bfloat16)
        # One MXU-filling matmul shared by all Bt graphs:  g = x @ W_l
        g = jnp.dot(cur.astype(jnp.bfloat16), w_bf,
                    preferred_element_type=jnp.float32)                  # (Bt*N, D) f32
        # Apply the normalized adjacency per graph:
        #   adj @ z = d * (A^T (d * z)) + d^2 * z
        # (matmul associativity: (adj @ x) @ W == adj @ (x @ W))
        for b in range(bt):
            z = g[b * n:(b + 1) * n, :]                                  # (N, D)
            d = d_col[b]
            t = jnp.dot(at_bf[b], (d * z).astype(jnp.bfloat16),
                        preferred_element_type=jnp.float32)              # A^T (d*z)
            h = d * t + (d * d) * z
            o_ref[pl.ds(b * n, n), :] = jnp.maximum(h, 0.0)              # ReLU, f32
        if l + 1 < num_layers:
            cur = o_ref[...]


def _pick_graphs_per_step(batch, n_nodes, target_rows=1024):
    """Largest divisor Bt of `batch` with Bt*N <= target_rows, keeping >= 2 grid
    steps when possible (v7x has 2 TensorCores per chip)."""
    divisors = [b for b in range(1, batch + 1) if batch % b == 0]
    fitting = [b for b in divisors if b * n_nodes <= target_rows] or [1]
    bt = max(fitting)
    while bt > 1 and batch // bt < 2:
        bt = max(b for b in divisors if b < bt)
    return bt


def multilayer_gcn(inputs, adjs, weights, *, graphs_per_step=None,
                   vmem_limit_bytes=48 * 1024 * 1024):
    """inputs: (B, N, D) f32, adjs: (B, N, N) f32, weights: (L, D, D) f32 -> (B, N, D) f32."""
    B, N, D = inputs.shape
    L, d_in, d_out = weights.shape
    assert adjs.shape == (B, N, N)
    assert d_in == D and d_out == D, "layers are chained, so in_features == out_features"

    bt = graphs_per_step if graphs_per_step is not None else _pick_graphs_per_step(B, N)
    assert B % bt == 0, "graphs_per_step must divide the batch"
    assert (bt * N) % 8 == 0 or bt == B, "row block must be sublane (8) aligned"

    # Graphs stacked along rows -> lane-dense (Bt*N, D) blocks for features/outputs.
    x2d = inputs.reshape(B * N, D).astype(jnp.float32)

    out2d = pl.pallas_call(
        multilayer_gcn_kernel,
        out_shape=jax.ShapeDtypeStruct((B * N, D), jnp.float32),
        grid_spec=pltpu.PrefetchScalarGridSpec(
            num_scalar_prefetch=0,
            grid=(B // bt,),                                        # Bt graphs per step
            in_specs=[
                pl.BlockSpec((bt, N, N), lambda g: (g, 0, 0)),      # adjacency slab
                pl.BlockSpec((bt * N, D), lambda g: (g, 0)),        # feature rows
                pl.BlockSpec((L, D, D), lambda g: (0, 0, 0)),       # all layer weights
            ],
            out_specs=pl.BlockSpec((bt * N, D), lambda g: (g, 0)),  # lane-dense output
        ),
        compiler_params=pltpu.CompilerParams(
            dimension_semantics=("parallel",),
            vmem_limit_bytes=vmem_limit_bytes,
        ),
    )(adjs.astype(jnp.float32), x2d, weights.astype(jnp.float32))
    return out2d.reshape(B, N, D)


def reference_jax(inputs, adjs, weights):
    """Pure-JAX f32 mirror of the PyTorch forward, for a correctness check."""
    n = adjs.shape[1]
    A = adjs + jnp.eye(n, dtype=adjs.dtype)[None]
    d = jnp.power(jnp.sum(A, axis=1), -0.5)
    Dm = jax.vmap(jnp.diag)(d)
    adj = jnp.matmul(jnp.swapaxes(jnp.matmul(A, Dm), 1, 2), Dm)
    x = inputs
    for l in range(weights.shape[0]):
        x = jax.nn.relu(jnp.matmul(jnp.matmul(adj, x), weights[l]))
    return x


if __name__ == "__main__":
    # Small shapes consistent with the module: chained layers require
    # in_features == out_features; D = 128 keeps the stored output lane-dense,
    # B=8 with 4 graphs/step gives a 2-step parallel grid (fills both v7x TCs).
    B, N, D, L = 8, 32, 128, 2

    key = jax.random.PRNGKey(0)
    k_x, k_a, k_w = jax.random.split(key, 3)

    inputs = jax.random.normal(k_x, (B, N, D), dtype=jnp.float32)
    # Non-negative adjacency so the degree normalization is well-defined.
    adjs = jax.random.uniform(k_a, (B, N, N), dtype=jnp.float32)

    # GCN.reset_parameters: weight ~ U(-stdv, stdv), stdv = 1/sqrt(out_features)
    stdv = 1.0 / math.sqrt(D)
    weights = jax.random.uniform(k_w, (L, D, D), dtype=jnp.float32,
                                 minval=-stdv, maxval=stdv)

    out = jax.block_until_ready(multilayer_gcn(inputs, adjs, weights, graphs_per_step=4))
    ref = jax.block_until_ready(reference_jax(inputs, adjs, weights))

    # bf16 MXU operands with f32 accumulation -> loosened tolerances.
    np.testing.assert_allclose(np.asarray(out), np.asarray(ref), rtol=2e-2, atol=2e-2)

    print("KERNEL_OK")
</pallas_src>

<mosaic_0001>
module attributes {stable_mosaic.version = 11 : i64} {
  func.func @multilayer_gcn_kernel(%arg0: i32, %arg1: memref<4x32x32xf32, #tpu.memory_space<vmem>>, %arg2: memref<128x128xf32, #tpu.memory_space<vmem>>, %arg3: memref<2x128x128xf32, #tpu.memory_space<vmem>>, %arg4: memref<128x128xf32, #tpu.memory_space<vmem>>) attributes {dimension_semantics = [#tpu.dimension_semantics<parallel>], iteration_bounds = array<i64: 2>, scalar_prefetch = 0 : i64, scratch_operands = 0 : i64, tpu.core_type = #tpu.core_type<tc>, window_params = [{transform_indices = @transform_0, window_bounds = array<i64: 4, 32, 32>}, {transform_indices = @transform_1, window_bounds = array<i64: 128, 128>}, {pipeline_mode = #tpu.pipeline_mode<synchronous>, transform_indices = @transform_2, window_bounds = array<i64: 2, 128, 128>}, {transform_indices = @transform_3, window_bounds = array<i64: 128, 128>}]} {
    %c0 = arith.constant 0 : index
    %c0_0 = arith.constant 0 : index
    %c0_1 = arith.constant 0 : index
    %0 = vector.load %arg1[%c0, %c0_0, %c0_1] : memref<4x32x32xf32, #tpu.memory_space<vmem>>, vector<1x32x32xf32>
    %1 = vector.shape_cast %0 : vector<1x32x32xf32> to vector<32x32xf32>
    %2 = tpu.transpose %1, [1, 0] : vector<32x32xf32> -> vector<32x32xf32>
    %cst = arith.constant dense<0.000000e+00> : vector<32xf32>
    %3 = vector.multi_reduction <add>, %2, %cst [1] : vector<32x32xf32> to vector<32xf32>
    %4 = vector.shape_cast %3 : vector<32xf32> to vector<32x1xf32>
    %cst_2 = arith.constant 1.000000e+00 : f32
    %5 = vector.broadcast %cst_2 : f32 to vector<32x1xf32>
    %6 = arith.addf %4, %5 : vector<32x1xf32>
    %7 = math.rsqrt %6 : vector<32x1xf32>
    %8 = arith.truncf %2 : vector<32x32xf32> to vector<32x32xbf16>
    %c1 = arith.constant 1 : index
    %c0_3 = arith.constant 0 : index
    %c0_4 = arith.constant 0 : index
    %9 = vector.load %arg1[%c1, %c0_3, %c0_4] : memref<4x32x32xf32, #tpu.memory_space<vmem>>, vector<1x32x32xf32>
    %10 = vector.shape_cast %9 : vector<1x32x32xf32> to vector<32x32xf32>
    %11 = tpu.transpose %10, [1, 0] : vector<32x32xf32> -> vector<32x32xf32>
    %cst_5 = arith.constant dense<0.000000e+00> : vector<32xf32>
    %12 = vector.multi_reduction <add>, %11, %cst_5 [1] : vector<32x32xf32> to vector<32xf32>
    %13 = vector.shape_cast %12 : vector<32xf32> to vector<32x1xf32>
    %cst_6 = arith.constant 1.000000e+00 : f32
    %14 = vector.broadcast %cst_6 : f32 to vector<32x1xf32>
    %15 = arith.addf %13, %14 : vector<32x1xf32>
    %16 = math.rsqrt %15 : vector<32x1xf32>
    %17 = arith.truncf %11 : vector<32x32xf32> to vector<32x32xbf16>
    %c2 = arith.constant 2 : index
    %c0_7 = arith.constant 0 : index
    %c0_8 = arith.constant 0 : index
    %18 = vector.load %arg1[%c2, %c0_7, %c0_8] : memref<4x32x32xf32, #tpu.memory_space<vmem>>, vector<1x32x32xf32>
    %19 = vector.shape_cast %18 : vector<1x32x32xf32> to vector<32x32xf32>
    %20 = tpu.transpose %19, [1, 0] : vector<32x32xf32> -> vector<32x32xf32>
    %cst_9 = arith.constant dense<0.000000e+00> : vector<32xf32>
    %21 = vector.multi_reduction <add>, %20, %cst_9 [1] : vector<32x32xf32> to vector<32xf32>
    %22 = vector.shape_cast %21 : vector<32xf32> to vector<32x1xf32>
    %cst_10 = arith.constant 1.000000e+00 : f32
    %23 = vector.broadcast %cst_10 : f32 to vector<32x1xf32>
    %24 = arith.addf %22, %23 : vector<32x1xf32>
    %25 = math.rsqrt %24 : vector<32x1xf32>
    %26 = arith.truncf %20 : vector<32x32xf32> to vector<32x32xbf16>
    %c3 = arith.constant 3 : index
    %c0_11 = arith.constant 0 : index
    %c0_12 = arith.constant 0 : index
    %27 = vector.load %arg1[%c3, %c0_11, %c0_12] : memref<4x32x32xf32, #tpu.memory_space<vmem>>, vector<1x32x32xf32>
    %28 = vector.shape_cast %27 : vector<1x32x32xf32> to vector<32x32xf32>
    %29 = tpu.transpose %28, [1, 0] : vector<32x32xf32> -> vector<32x32xf32>
    %cst_13 = arith.constant dense<0.000000e+00> : vector<32xf32>
    %30 = vector.multi_reduction <add>, %29, %cst_13 [1] : vector<32x32xf32> to vector<32xf32>
    %31 = vector.shape_cast %30 : vector<32xf32> to vector<32x1xf32>
    %cst_14 = arith.constant 1.000000e+00 : f32
    %32 = vector.broadcast %cst_14 : f32 to vector<32x1xf32>
    %33 = arith.addf %31, %32 : vector<32x1xf32>
    %34 = math.rsqrt %33 : vector<32x1xf32>
    %35 = arith.truncf %29 : vector<32x32xf32> to vector<32x32xbf16>
    %c0_15 = arith.constant 0 : index
    %c0_16 = arith.constant 0 : index
    %36 = vector.load %arg2[%c0_15, %c0_16] : memref<128x128xf32, #tpu.memory_space<vmem>>, vector<128x128xf32>
    %c0_17 = arith.constant 0 : index
    %c0_18 = arith.constant 0 : index
    %c0_19 = arith.constant 0 : index
    %37 = vector.load %arg3[%c0_17, %c0_18, %c0_19] : memref<2x128x128xf32, #tpu.memory_space<vmem>>, vector<1x128x128xf32>
    %38 = vector.shape_cast %37 : vector<1x128x128xf32> to vector<128x128xf32>
    %39 = arith.truncf %38 : vector<128x128xf32> to vector<128x128xbf16>
    %40 = arith.truncf %36 : vector<128x128xf32> to vector<128x128xbf16>
    %cst_20 = arith.constant dense<0.000000e+00> : vector<128x128xf32>
    %41 = tpu.matmul %40, %39, %cst_20 {dimension_numbers = #tpu.dot_dimension_numbers<[1], [0], [0], [1], [0, 0, 1, 1], [], []>} : vector<128x128xbf16>, vector<128x128xbf16>, vector<128x128xf32> -> vector<128x128xf32>
    %42 = vector.extract_strided_slice %41 {offsets = [0, 0], sizes = [32, 128], strides = [1, 1]} : vector<128x128xf32> to vector<32x128xf32>
    %43 = vector.broadcast %7 : vector<32x1xf32> to vector<32x128xf32>
    %44 = arith.mulf %43, %42 : vector<32x128xf32>
    %45 = arith.truncf %44 : vector<32x128xf32> to vector<32x128xbf16>
    %cst_21 = arith.constant dense<0.000000e+00> : vector<32x128xf32>
    %46 = tpu.matmul %8, %45, %cst_21 {dimension_numbers = #tpu.dot_dimension_numbers<[1], [0], [0], [1], [0, 0, 1, 1], [], []>} : vector<32x32xbf16>, vector<32x128xbf16>, vector<32x128xf32> -> vector<32x128xf32>
    %47 = vector.broadcast %7 : vector<32x1xf32> to vector<32x128xf32>
    %48 = arith.mulf %47, %46 : vector<32x128xf32>
    %49 = arith.mulf %7, %7 : vector<32x1xf32>
    %50 = vector.broadcast %49 : vector<32x1xf32> to vector<32x128xf32>
    %51 = arith.mulf %50, %42 : vector<32x128xf32>
    %52 = arith.addf %48, %51 : vector<32x128xf32>
    %cst_22 = arith.constant 0.000000e+00 : f32
    %53 = vector.broadcast %cst_22 : f32 to vector<32x128xf32>
    %54 = arith.maximumf %52, %53 : vector<32x128xf32>
    %c0_23 = arith.constant 0 : index
    %c0_24 = arith.constant 0 : index
    %55 = vector.load %arg4[%c0_23, %c0_24] : memref<128x128xf32, #tpu.memory_space<vmem>>, vector<32x128xf32>
    tpu.vector_store %arg4[%c0_23, %c0_24], %54 {strides = array<i32>} : memref<128x128xf32, #tpu.memory_space<vmem>>, vector<32x128xf32>,
    %56 = vector.extract_strided_slice %41 {offsets = [32, 0], sizes = [32, 128], strides = [1, 1]} : vector<128x128xf32> to vector<32x128xf32>
    %57 = vector.broadcast %16 : vector<32x1xf32> to vector<32x128xf32>
    %58 = arith.mulf %57, %56 : vector<32x128xf32>
    %59 = arith.truncf %58 : vector<32x128xf32> to vector<32x128xbf16>
    %cst_25 = arith.constant dense<0.000000e+00> : vector<32x128xf32>
    %60 = tpu.matmul %17, %59, %cst_25 {dimension_numbers = #tpu.dot_dimension_numbers<[1], [0], [0], [1], [0, 0, 1, 1], [], []>} : vector<32x32xbf16>, vector<32x128xbf16>, vector<32x128xf32> -> vector<32x128xf32>
    %61 = vector.broadcast %16 : vector<32x1xf32> to vector<32x128xf32>
    %62 = arith.mulf %61, %60 : vector<32x128xf32>
    %63 = arith.mulf %16, %16 : vector<32x1xf32>
    %64 = vector.broadcast %63 : vector<32x1xf32> to vector<32x128xf32>
    %65 = arith.mulf %64, %56 : vector<32x128xf32>
    %66 = arith.addf %62, %65 : vector<32x128xf32>
    %cst_26 = arith.constant 0.000000e+00 : f32
    %67 = vector.broadcast %cst_26 : f32 to vector<32x128xf32>
    %68 = arith.maximumf %66, %67 : vector<32x128xf32>
    %c32 = arith.constant 32 : index
    %c0_27 = arith.constant 0 : index
    %69 = vector.load %arg4[%c32, %c0_27] : memref<128x128xf32, #tpu.memory_space<vmem>>, vector<32x128xf32>
    tpu.vector_store %arg4[%c32, %c0_27], %68 {strides = array<i32>} : memref<128x128xf32, #tpu.memory_space<vmem>>, vector<32x128xf32>,
    %70 = vector.extract_strided_slice %41 {offsets = [64, 0], sizes = [32, 128], strides = [1, 1]} : vector<128x128xf32> to vector<32x128xf32>
    %71 = vector.broadcast %25 : vector<32x1xf32> to vector<32x128xf32>
    %72 = arith.mulf %71, %70 : vector<32x128xf32>
    %73 = arith.truncf %72 : vector<32x128xf32> to vector<32x128xbf16>
    %cst_28 = arith.constant dense<0.000000e+00> : vector<32x128xf32>
    %74 = tpu.matmul %26, %73, %cst_28 {dimension_numbers = #tpu.dot_dimension_numbers<[1], [0], [0], [1], [0, 0, 1, 1], [], []>} : vector<32x32xbf16>, vector<32x128xbf16>, vector<32x128xf32> -> vector<32x128xf32>
    %75 = vector.broadcast %25 : vector<32x1xf32> to vector<32x128xf32>
    %76 = arith.mulf %75, %74 : vector<32x128xf32>
    %77 = arith.mulf %25, %25 : vector<32x1xf32>
    %78 = vector.broadcast %77 : vector<32x1xf32> to vector<32x128xf32>
    %79 = arith.mulf %78, %70 : vector<32x128xf32>
    %80 = arith.addf %76, %79 : vector<32x128xf32>
    %cst_29 = arith.constant 0.000000e+00 : f32
    %81 = vector.broadcast %cst_29 : f32 to vector<32x128xf32>
    %82 = arith.maximumf %80, %81 : vector<32x128xf32>
    %c64 = arith.constant 64 : index
    %c0_30 = arith.constant 0 : index
    %83 = vector.load %arg4[%c64, %c0_30] : memref<128x128xf32, #tpu.memory_space<vmem>>, vector<32x128xf32>
    tpu.vector_store %arg4[%c64, %c0_30], %82 {strides = array<i32>} : memref<128x128xf32, #tpu.memory_space<vmem>>, vector<32x128xf32>,
    %84 = vector.extract_strided_slice %41 {offsets = [96, 0], sizes = [32, 128], strides = [1, 1]} : vector<128x128xf32> to vector<32x128xf32>
    %85 = vector.broadcast %34 : vector<32x1xf32> to vector<32x128xf32>
    %86 = arith.mulf %85, %84 : vector<32x128xf32>
    %87 = arith.truncf %86 : vector<32x128xf32> to vector<32x128xbf16>
    %cst_31 = arith.constant dense<0.000000e+00> : vector<32x128xf32>
    %88 = tpu.matmul %35, %87, %cst_31 {dimension_numbers = #tpu.dot_dimension_numbers<[1], [0], [0], [1], [0, 0, 1, 1], [], []>} : vector<32x32xbf16>, vector<32x128xbf16>, vector<32x128xf32> -> vector<32x128xf32>
    %89 = vector.broadcast %34 : vector<32x1xf32> to vector<32x128xf32>
    %90 = arith.mulf %89, %88 : vector<32x128xf32>
    %91 = arith.mulf %34, %34 : vector<32x1xf32>
    %92 = vector.broadcast %91 : vector<32x1xf32> to vector<32x128xf32>
    %93 = arith.mulf %92, %84 : vector<32x128xf32>
    %94 = arith.addf %90, %93 : vector<32x128xf32>
    %cst_32 = arith.constant 0.000000e+00 : f32
    %95 = vector.broadcast %cst_32 : f32 to vector<32x128xf32>
    %96 = arith.maximumf %94, %95 : vector<32x128xf32>
    %c96 = arith.constant 96 : index
    %c0_33 = arith.constant 0 : index
    %97 = vector.load %arg4[%c96, %c0_33] : memref<128x128xf32, #tpu.memory_space<vmem>>, vector<32x128xf32>
    tpu.vector_store %arg4[%c96, %c0_33], %96 {strides = array<i32>} : memref<128x128xf32, #tpu.memory_space<vmem>>, vector<32x128xf32>,
    %c0_34 = arith.constant 0 : index
    %c0_35 = arith.constant 0 : index
    %98 = vector.load %arg4[%c0_34, %c0_35] : memref<128x128xf32, #tpu.memory_space<vmem>>, vector<128x128xf32>
    %c1_36 = arith.constant 1 : index
    %c0_37 = arith.constant 0 : index
    %c0_38 = arith.constant 0 : index
    %99 = vector.load %arg3[%c1_36, %c0_37, %c0_38] : memref<2x128x128xf32, #tpu.memory_space<vmem>>, vector<1x128x128xf32>
    %100 = vector.shape_cast %99 : vector<1x128x128xf32> to vector<128x128xf32>
    %101 = arith.truncf %100 : vector<128x128xf32> to vector<128x128xbf16>
    %102 = arith.truncf %98 : vector<128x128xf32> to vector<128x128xbf16>
    %cst_39 = arith.constant dense<0.000000e+00> : vector<128x128xf32>
    %103 = tpu.matmul %102, %101, %cst_39 {dimension_numbers = #tpu.dot_dimension_numbers<[1], [0], [0], [1], [0, 0, 1, 1], [], []>} : vector<128x128xbf16>, vector<128x128xbf16>, vector<128x128xf32> -> vector<128x128xf32>
    %104 = vector.extract_strided_slice %103 {offsets = [0, 0], sizes = [32, 128], strides = [1, 1]} : vector<128x128xf32> to vector<32x128xf32>
    %105 = vector.broadcast %7 : vector<32x1xf32> to vector<32x128xf32>
    %106 = arith.mulf %105, %104 : vector<32x128xf32>
    %107 = arith.truncf %106 : vector<32x128xf32> to vector<32x128xbf16>
    %cst_40 = arith.constant dense<0.000000e+00> : vector<32x128xf32>
    %108 = tpu.matmul %8, %107, %cst_40 {dimension_numbers = #tpu.dot_dimension_numbers<[1], [0], [0], [1], [0, 0, 1, 1], [], []>} : vector<32x32xbf16>, vector<32x128xbf16>, vector<32x128xf32> -> vector<32x128xf32>
    %109 = vector.broadcast %7 : vector<32x1xf32> to vector<32x128xf32>
    %110 = arith.mulf %109, %108 : vector<32x128xf32>
    %111 = arith.mulf %7, %7 : vector<32x1xf32>
    %112 = vector.broadcast %111 : vector<32x1xf32> to vector<32x128xf32>
    %113 = arith.mulf %112, %104 : vector<32x128xf32>
    %114 = arith.addf %110, %113 : vector<32x128xf32>
    %cst_41 = arith.constant 0.000000e+00 : f32
    %115 = vector.broadcast %cst_41 : f32 to vector<32x128xf32>
    %116 = arith.maximumf %114, %115 : vector<32x128xf32>
    %c0_42 = arith.constant 0 : index
    %c0_43 = arith.constant 0 : index
    %117 = vector.load %arg4[%c0_42, %c0_43] : memref<128x128xf32, #tpu.memory_space<vmem>>, vector<32x128xf32>
    tpu.vector_store %arg4[%c0_42, %c0_43], %116 {strides = array<i32>} : memref<128x128xf32, #tpu.memory_space<vmem>>, vector<32x128xf32>,
    %118 = vector.extract_strided_slice %103 {offsets = [32, 0], sizes = [32, 128], strides = [1, 1]} : vector<128x128xf32> to vector<32x128xf32>
    %119 = vector.broadcast %16 : vector<32x1xf32> to vector<32x128xf32>
    %120 = arith.mulf %119, %118 : vector<32x128xf32>
    %121 = arith.truncf %120 : vector<32x128xf32> to vector<32x128xbf16>
    %cst_44 = arith.constant dense<0.000000e+00> : vector<32x128xf32>
    %122 = tpu.matmul %17, %121, %cst_44 {dimension_numbers = #tpu.dot_dimension_numbers<[1], [0], [0], [1], [0, 0, 1, 1], [], []>} : vector<32x32xbf16>, vector<32x128xbf16>, vector<32x128xf32> -> vector<32x128xf32>
    %123 = vector.broadcast %16 : vector<32x1xf32> to vector<32x128xf32>
    %124 = arith.mulf %123, %122 : vector<32x128xf32>
    %125 = arith.mulf %16, %16 : vector<32x1xf32>
    %126 = vector.broadcast %125 : vector<32x1xf32> to vector<32x128xf32>
    %127 = arith.mulf %126, %118 : vector<32x128xf32>
    %128 = arith.addf %124, %127 : vector<32x128xf32>
    %cst_45 = arith.constant 0.000000e+00 : f32
    %129 = vector.broadcast %cst_45 : f32 to vector<32x128xf32>
    %130 = arith.maximumf %128, %129 : vector<32x128xf32>
    %c32_46 = arith.constant 32 : index
    %c0_47 = arith.constant 0 : index
    %131 = vector.load %arg4[%c32_46, %c0_47] : memref<128x128xf32, #tpu.memory_space<vmem>>, vector<32x128xf32>
    tpu.vector_store %arg4[%c32_46, %c0_47], %130 {strides = array<i32>} : memref<128x128xf32, #tpu.memory_space<vmem>>, vector<32x128xf32>,
    %132 = vector.extract_strided_slice %103 {offsets = [64, 0], sizes = [32, 128], strides = [1, 1]} : vector<128x128xf32> to vector<32x128xf32>
    %133 = vector.broadcast %25 : vector<32x1xf32> to vector<32x128xf32>
    %134 = arith.mulf %133, %132 : vector<32x128xf32>
    %135 = arith.truncf %134 : vector<32x128xf32> to vector<32x128xbf16>
    %cst_48 = arith.constant dense<0.000000e+00> : vector<32x128xf32>
    %136 = tpu.matmul %26, %135, %cst_48 {dimension_numbers = #tpu.dot_dimension_numbers<[1], [0], [0], [1], [0, 0, 1, 1], [], []>} : vector<32x32xbf16>, vector<32x128xbf16>, vector<32x128xf32> -> vector<32x128xf32>
    %137 = vector.broadcast %25 : vector<32x1xf32> to vector<32x128xf32>
    %138 = arith.mulf %137, %136 : vector<32x128xf32>
    %139 = arith.mulf %25, %25 : vector<32x1xf32>
    %140 = vector.broadcast %139 : vector<32x1xf32> to vector<32x128xf32>
    %141 = arith.mulf %140, %132 : vector<32x128xf32>
    %142 = arith.addf %138, %141 : vector<32x128xf32>
    %cst_49 = arith.constant 0.000000e+00 : f32
    %143 = vector.broadcast %cst_49 : f32 to vector<32x128xf32>
    %144 = arith.maximumf %142, %143 : vector<32x128xf32>
    %c64_50 = arith.constant 64 : index
    %c0_51 = arith.constant 0 : index
    %145 = vector.load %arg4[%c64_50, %c0_51] : memref<128x128xf32, #tpu.memory_space<vmem>>, vector<32x128xf32>
    tpu.vector_store %arg4[%c64_50, %c0_51], %144 {strides = array<i32>} : memref<128x128xf32, #tpu.memory_space<vmem>>, vector<32x128xf32>,
    %146 = vector.extract_strided_slice %103 {offsets = [96, 0], sizes = [32, 128], strides = [1, 1]} : vector<128x128xf32> to vector<32x128xf32>
    %147 = vector.broadcast %34 : vector<32x1xf32> to vector<32x128xf32>
    %148 = arith.mulf %147, %146 : vector<32x128xf32>
    %149 = arith.truncf %148 : vector<32x128xf32> to vector<32x128xbf16>
    %cst_52 = arith.constant dense<0.000000e+00> : vector<32x128xf32>
    %150 = tpu.matmul %35, %149, %cst_52 {dimension_numbers = #tpu.dot_dimension_numbers<[1], [0], [0], [1], [0, 0, 1, 1], [], []>} : vector<32x32xbf16>, vector<32x128xbf16>, vector<32x128xf32> -> vector<32x128xf32>
    %151 = vector.broadcast %34 : vector<32x1xf32> to vector<32x128xf32>
    %152 = arith.mulf %151, %150 : vector<32x128xf32>
    %153 = arith.mulf %34, %34 : vector<32x1xf32>
    %154 = vector.broadcast %153 : vector<32x1xf32> to vector<32x128xf32>
    %155 = arith.mulf %154, %146 : vector<32x128xf32>
    %156 = arith.addf %152, %155 : vector<32x128xf32>
    %cst_53 = arith.constant 0.000000e+00 : f32
    %157 = vector.broadcast %cst_53 : f32 to vector<32x128xf32>
    %158 = arith.maximumf %156, %157 : vector<32x128xf32>
    %c96_54 = arith.constant 96 : index
    %c0_55 = arith.constant 0 : index
    %159 = vector.load %arg4[%c96_54, %c0_55] : memref<128x128xf32, #tpu.memory_space<vmem>>, vector<32x128xf32>
    tpu.vector_store %arg4[%c96_54, %c0_55], %158 {strides = array<i32>} : memref<128x128xf32, #tpu.memory_space<vmem>>, vector<32x128xf32>,
    return
  }
  func.func @transform_0(%arg0: i32) -> (i32, i32, i32) {
    %c0_i32 = arith.constant 0 : i32
    %c0_i32_0 = arith.constant 0 : i32
    %c0_i32_1 = arith.constant 0 : i32
    return %arg0, %c0_i32, %c0_i32_0 : i32, i32, i32
  }
  func.func @transform_1(%arg0: i32) -> (i32, i32) {
    %c0_i32 = arith.constant 0 : i32
    %c0_i32_0 = arith.constant 0 : i32
    return %arg0, %c0_i32 : i32, i32
  }
  func.func @transform_2(%arg0: i32) -> (i32, i32, i32) {
    %c0_i32 = arith.constant 0 : i32
    %c0_i32_0 = arith.constant 0 : i32
    %c0_i32_1 = arith.constant 0 : i32
    %c0_i32_2 = arith.constant 0 : i32
    return %c0_i32, %c0_i32_0, %c0_i32_1 : i32, i32, i32
  }
  func.func @transform_3(%arg0: i32) -> (i32, i32) {
    %c0_i32 = arith.constant 0 : i32
    %c0_i32_0 = arith.constant 0 : i32
    return %arg0, %c0_i32 : i32, i32
  }
}

</mosaic_0001>

<bundles_post_ra>
// kernel: tpu_custom_call.1
= control target key start
LH: loop header
LB: loop body
LE: loop exit
PB: predicated region body
PF: predicated region fallthrough
CT: control target
= control target key end

     0   :  { %s2783_s0 = inlined_call_operand.hbm [shape: f32[8,32,32], index: 0, kind: input, shape index: {}]   ;;  %s2784_s1 = inlined_call_operand.hbm [shape: f32[256,128], index: 1, kind: input, shape index: {}]   ;;  %s2785_s2 = inlined_call_operand.hbm [shape: f32[2,128,128], index: 2, kind: input, shape index: {}]   ;;  %s2786_s3 = inlined_call_operand.hbm [shape: f32[256,128], index: 3, kind: output, shape index: {}]  }
   0x1   :  { %2794 = sst [smem:[#allocation13_spill]] %s2783_s0 }
   0x2   :  { %2795 = sst [smem:[#allocation14_spill]] %s2785_s2 }
   0x3   :  { %8 = vsyncpa [#allocation3], 0 }
   0x4   :  { %10 = vsyncpa [#allocation3 + $0x1], 0 }
   0x5   :  { %11 = vsyncpa [#allocation6], 0 }
   0x6   :  { %13 = vsyncpa [#allocation6 + $0x1], 0 }
   0x7   :  { %14 = vsyncpa [#allocation4], 0 }
   0x8   :  { %16 = vsyncpa [#allocation4 + $0x1], 0  ;;  %s2070_s12 = smov 0   ;;  %s2072_s13 = smov 0  }
   0x9   :  { %s2074_s14 = smov 0   ;;  %s2076_s15 = smov 0  }
   0xa LB: > { %s2091_s16 = sadd.s32 4294967295, %s2040_s15   ;;  %s1534_s17 = sadd.s32 4294967294, %s2040_s15   ;;  %s2040_s15 = sphi %s2076_s15, %s2816_s15   ;;  %s2036_s14 = sphi %s2074_s14, %s2815_s14   ;;  %s2032_s13 = sphi %s2072_s13, %s2814_s13   ;;  %s2028_s12 = sphi %s2070_s12, %s2813_s12  }
   0xb   : > { %p42_p0 = scmp.ne.s32.totalorder %s2032_s13, %s2028_s12  ;;  %p2787_p1 = scmp.eq.s32.totalorder %s2091_s16, 0 }
   0xc   : > { %p119_p3 = scmp.eq.s32.totalorder %s1534_s17, 1  ;;  %p1535_p5 = scmp.ge.s32.totalorder %s2040_s15, 1 }
   0xd   : > { %p2100_p4 = por %p2787_p1, %p42_p0  ;;  %p126_p7 = scmp.lt.s32.totalorder %s2040_s15, 3 }
   0xe   : > { %p2105_p6 = por %p119_p3, %p42_p0  ;;  %s2042_s21 = smov [#allocation7]  }
   0xf   : > { %s2796_s18 = scalar_select %p2100_p4, 1, 0 }
  0x10   : > { %s2797_s19 = scalar_select %p2105_p6, 1, 0 }
  0x11   : > { %p2110_p8 = pnand %p1535_p5, %p126_p7  ;;  %s138_s22 = sshll.u32 %s2042_s21, 4  ;;  %s2114_s22 = int_to_ptr.vmem [resolvable:$true] %s138_s22 }
  0x12   : > { %s2126_s24 = sadd.s32 1, %s2040_s15   ;;  %s29_s25 = sadd.s32 1, %s2036_s14 }
  0x13   : > { %s2798_s20 = scalar_select %p2110_p8, 1, 0 }
  0x14   : > { %p1789_p9 = pneg %p2110_p8  ;;  %s26_s26 = ssub.s32 %s2040_s15, %s2126_s24 }
  0x15   : > { %s2800_s2 = sld [smem:[#allocation14_spill]] }
  0x16   : > { %p2121_p11 = pnand %p1789_p9, %p2787_p1 }
  0x18   : > { %p1880_p13 = pneg %p2121_p11 }
  0x1b   : > { %s1878_s29 = scalar_lea.hbm %s2800_s2, 4096 }
  0x1c   : > { %p1879_p12 = scmp.ne.s32.totalorder %s2800_s2, %s1878_s29  ;;  %p1885_p5 = scmp.lt.u32.totalorder %s1878_s29, %s2800_s2 }
  0x1e   : > { %p1881_p0 = pnand %p1880_p13, %p1879_p12 }
  0x20   : > { %p1882_p3 = pneg %p1881_p0 }
  0x22   : > { %p1887_p7 = pnand %p1885_p5, %p1882_p3 }
  0x24   : > { %1890 = shalt.err (!%p1887_p7)
}
  0x25   : > { %s1891_s7 = scalar_lea.vmem %s2114_s22, 4096  ;;  %p1899_p2 = scmp.lt.s32.totalorder %s2114_s22, %s2114_s22 }
  0x26   : > { %p1892_p9 = scmp.ne.s32.totalorder %s2114_s22, %s1891_s7  ;;  %p1900_p6 = scmp.lt.s32.totalorder %s1891_s7, %s1891_s7 }
  0x28   : > { %p1894_p10 = pnand %p1892_p9, %p1880_p13  ;;  %p1901_p4 = por %p1900_p6, %p1899_p2 }
  0x2a   : > { %p1895_p1 = pneg %p1894_p10 }
  0x2c   : > { %p1902_p8 = pnand %p1901_p4, %p1895_p1 }
  0x2e   : > { %1905 = shalt.err (!%p1902_p8)
}
  0x2f   : > { %s2790_s8 = smov 128   ;;  %s2792_s9 = smov 8  }
  0x30   : > { %1792 = dma.hbm_to_vmem [thread:$0]  (!%p2121_p11), %s2800_s2, 4096, %s2114_s22, [#allocation6], %s2790_s8, %s2790_s8, %s2792_s9  }
  0x31   : > { %p27_p1 = scmp.eq.s32.totalorder %s26_s26, 0  ;;  %p36_p2 = scmp.ne.s32.totalorder %s2036_s14, %s2032_s13 }
  0x32   : > { %p37_p4 = scmp.eq.s32.totalorder %s2040_s15, 0  ;;  %p1805_p6 = scmp.lt.s32.totalorder %s2040_s15, 2 }
  0x33   : > { %s2160_s17 = scalar_select %p27_p1, %s2036_s14, %s29_s25  }
  0x34   : > { %p38_p8 = por %p37_p4, %p36_p2  ;;  %p2801_p10 = scmp.eq.s32.totalorder %s2091_s16, 1 }
  0x35   : > { %s152_s23 = sand.u32 1, %s2036_s14   ;;  %s1584_s27 = sshll.u32 %s2040_s15, 11 }
  0x36   : > { %p2164_p12 = por %p2801_p10, %p36_p2  ;;  %s2170_s28 = sshll.u32 %s152_s23, 7 }
  0x37   : > { %s2803_s0 = sld [smem:[#allocation13_spill]]  ;;  %s156_s25 = scalar_lea.vmem [#allocation2], %s2170_s28 }
  0x38   : > { %s164_s26 = sshll.u32 %s156_s25, 4  ;;  %p2178_p11 = pnand %p1805_p6, %p38_p8  ;;  %s2182_s26 = int_to_ptr.vmem [resolvable:$true] %s164_s26 }
  0x39   : > { %s2187_s7 = scalar_lea.hbm %s2784_s1, %s1584_s27  ;;  %s2189_s10 = scalar_lea.sflag [#allocation3], %s152_s23 }
  0x3a   : > { %p1908_p0 = pneg %p2178_p11 }
  0x3d   : > { %s2175_s22 = scalar_lea.hbm %s2803_s0, %s1584_s27  ;;  %s1911_s25 = scalar_lea.hbm %s2803_s0, 4096 }
  0x3e   : > { %s1906_s11 = scalar_lea.hbm %s2175_s22, 2048  ;;  %p1912_p7 = scmp.lt.u32.totalorder %s2175_s22, %s2803_s0 }
  0x3f   : > { %p1907_p13 = scmp.ne.s32.totalorder %s2175_s22, %s1906_s11  ;;  %p1913_p9 = scmp.lt.u32.totalorder %s1911_s25, %s1906_s11 }
  0x40   : > { %p1915_p2 = scmp.lt.u32.totalorder %s1906_s11, %s2175_s22 }
  0x41   : > { %p1909_p3 = pnand %p1908_p0, %p1907_p13  ;;  %p1914_p1 = por %p1913_p9, %p1912_p7 }
  0x43   : > { %p1910_p5 = pneg %p1909_p3  ;;  %p1916_p4 = por %p1915_p2, %p1914_p1 }
  0x45   : > { %p1917_p6 = pnand %p1916_p4, %p1910_p5 }
  0x47   : > { %1920 = shalt.err (!%p1917_p6)
}
  0x48   : > { %s1921_s23 = scalar_lea.vmem %s2182_s26, 2048  ;;  %s2045_s27 = smov [#allocation2]  }
  0x49   : > { %p1922_p8 = scmp.ne.s32.totalorder %s2182_s26, %s1921_s23  ;;  %s1926_s5 = sshll.u32 %s2045_s27, 4  ;;  %s1927_s5 = int_to_ptr.vmem [resolvable:$false] %s1926_s5 }
  0x4a   : > { %s1928_s8 = scalar_lea.vmem %s1927_s5, 4096  ;;  %p1929_p3 = scmp.lt.s32.totalorder %s2182_s26, %s1927_s5 }
  0x4b   : > { %p1924_p10 = pnand %p1922_p8, %p1908_p0  ;;  %p1930_p7 = scmp.lt.s32.totalorder %s1928_s8, %s1921_s23 }
  0x4d   : > { %p1925_p13 = pneg %p1924_p10  ;;  %p1931_p9 = por %p1930_p7, %p1929_p3 }
  0x4f   : > { %p1932_p1 = pnand %p1931_p9, %p1925_p13 }
  0x51   : > { %1935 = shalt.err (!%p1932_p1)
}
  0x52   : > { %s2805_s9 = smov 8   ;;  %s2806_s6 = smov 128  }
  0x53   : > { %1796 = dma.hbm_to_vmem [thread:$0]  (!%p2178_p11), %s2175_s22, 2048, %s2182_s26, %s2189_s10, %s2806_s6, %s2806_s6, %s2805_s9  }
  0x54   : > { %s178_s11 = scalar_lea.vmem [#allocation5], %s2170_s28  ;;  %s174_s30 = sand.u32 1, %s2040_s15  }
  0x55   : > { %s185_s29 = sshll.u32 %s178_s11, 4  ;;  %s2224_s25 = scalar_lea.sflag [#allocation6], %s174_s30  ;;  %s2222_s29 = int_to_ptr.vmem [resolvable:$true] %s185_s29 }
  0x56   : > { %s1936_s23 = scalar_lea.hbm %s2187_s7, 2048  ;;  %s1941_s8 = scalar_lea.hbm %s2784_s1, 4096 }
  0x57   : > { %p1937_p5 = scmp.ne.s32.totalorder %s2187_s7, %s1936_s23  ;;  %p1942_p6 = scmp.lt.u32.totalorder %s2187_s7, %s2784_s1 }
  0x58   : > { %p1943_p8 = scmp.lt.u32.totalorder %s1941_s8, %s1936_s23  ;;  %p1945_p13 = scmp.lt.u32.totalorder %s1936_s23, %s2187_s7 }
  0x59   : > { %p1939_p2 = pnand %p1937_p5, %p1908_p0 }
  0x5a   : > { %p1944_p10 = por %p1943_p8, %p1942_p6 }
  0x5b   : > { %p1940_p4 = pneg %p1939_p2 }
  0x5c   : > { %p1946_p3 = por %p1945_p13, %p1944_p10 }
  0x5e   : > { %p1947_p7 = pnand %p1946_p3, %p1940_p4 }
  0x60   : > { %1950 = shalt.err (!%p1947_p7)
}
  0x61   : > { %s1951_s28 = scalar_lea.vmem %s2222_s29, 2048  ;;  %s2046_s22 = smov [#allocation5]  }
  0x62   : > { %p1952_p9 = scmp.ne.s32.totalorder %s2222_s29, %s1951_s28  ;;  %s1956_s26 = sshll.u32 %s2046_s22, 4  ;;  %s1957_s26 = int_to_ptr.vmem [resolvable:$false] %s1956_s26 }
  0x63   : > { %s1958_s0 = scalar_lea.vmem %s1957_s26, 4096  ;;  %p1959_p2 = scmp.lt.s32.totalorder %s2222_s29, %s1957_s26 }
  0x64   : > { %p1954_p1 = pnand %p1952_p9, %p1908_p0  ;;  %p1960_p6 = scmp.lt.s32.totalorder %s1958_s0, %s1951_s28 }
  0x66   : > { %p1955_p5 = pneg %p1954_p1  ;;  %p1961_p8 = por %p1960_p6, %p1959_p2 }
  0x68   : > { %p1962_p10 = pnand %p1961_p8, %p1955_p5 }
  0x6a   : > { %1965 = shalt.err (!%p1962_p10)
}
  0x6b   : > { %1799 = dma.hbm_to_vmem [thread:$0]  (!%p2178_p11), %s2187_s7, 2048, %s2222_s29, %s2224_s25, %s2806_s6, %s2806_s6, %s2805_s9  }
  0x6c   : > { %p2807_p0 = scmp.ne.s32.totalorder %s2798_s20, 0 }
  0x6d   : > { %s2256_s2 = sand.u32 (!%p2807_p0), 1, %s2032_s13   ;;  %p2808_p4 = scmp.ne.s32.totalorder (!%p2807_p0), %s2796_s18, 0 }
  0x6e   : > { %197 = sbr.rel (%p2807_p0) target bundleno = 1141 (0x475), region = 32  ;;  %s2259_s10 = sshll.u32 (!%p2807_p0), %s2256_s2, 7 }
  0x6f   : > { %s200_s4 = scalar_lea.sflag (!%p2807_p0), [#allocation3], %s2256_s2  ;;  %s2263_s11 = scalar_lea.vmem (!%p2807_p0), [#allocation2], %s2259_s10 }
  0x75   : > { %2011 = dma.done.wait (%p2808_p4), %s200_s4, 2048  }
  0x76   : > { %2013 = vsyncadd (%p2808_p4), %s200_s4, 4294965248  ;;  %s208_s20 = sand.u32 1, %s2091_s16   ;;  %s2271_s9 = scalar_lea.vmem [#allocation5], %s2259_s10 }
  0x77   : > { %s209_s7 = scalar_lea.sflag [#allocation6], %s208_s20 }
  0x78   : > { %2015 = dma.done.wait (%p2808_p4), %s209_s7, 2048  }
  0x79   : > { %2017 = vsyncadd (%p2808_p4), %s209_s7, 4294965248  ;;  %p2809_p11 = scmp.eq.s32.totalorder %s2091_s16, 0 }
  0x7b   : > { %2019 = dma.done.wait (%p2809_p11), [#allocation6], 4096   ;;  %p2810_p13 = pmov %p2809_p11 }
  0x7c   : > { %v248_v0 = vld [vmem:[%s2263_s11] sm:$0xff]  ;;  %v249_v2 = vld [vmem:[%s2263_s11 + $0x8] sm:$0xff]  ;;  %v250_v4 = vld [vmem:[%s2263_s11 + $0x10] sm:$0xff]  ;;  %vm284_vm0 = vcmask 261120   ;;  %s2678_s18 = scalar_lea.vmem [#allocation8], %s2259_s10  ;;  %s1586_s6 = sshll.u32 %s2091_s16, 11 }
  0x7d   : > { %2021 = vsyncadd (%p2810_p13), [#allocation6], 4294963200  ;;  %v1550_v1 = vld [vmem:[%s2263_s11 + $0x20] sm:$0xff]  ;;  %252 = vxpose.xlu0.b32.start [1/4] (short) (narrow) %v248_v0, 32  ;;  %v1551_v3 = vld [vmem:[%s2263_s11 + $0x28] sm:$0xff]  ;;  %s1429_s29 = sshll.u32 %s2678_s18, 4  ;;  %s2734_s23 = scalar_lea.hbm %s2786_s3, %s1586_s6  ;;  %s2736_s29 = int_to_ptr.vmem [resolvable:$true] %s1429_s29 }
  0x7e   : > { %312 = vxpose.xlu1.b32.start [1/4] (short) (narrow) %v1550_v1, 32  ;;  %v500_v5 = vld [vmem:[#allocation7] sm:$0xff]  ;;  %v501_v6 = vld [vmem:[#allocation7 + $0x8] sm:$0xff]  ;;  %v1552_v7 = vld [vmem:[%s2263_s11 + $0x30] sm:$0xff]  ;;  %s1416_s16 = scalar_lea.sflag [#allocation4], %s2256_s2  ;;  %s1966_s27 = scalar_lea.vmem %s2736_s29, 2048 }
  0x7f   : > { %v516_v8 = vpack.c.bf16 %v501_v6, %v500_v5  ;;  %v502_v9 = vld [vmem:[#allocation7 + $0x10] sm:$0xff]  ;;  %v503_v10 = vld [vmem:[#allocation7 + $0x18] sm:$0xff]  ;;  %v504_v12 = vld [vmem:[#allocation7 + $0x20] sm:$0xff]  ;;  %p1967_p3 = scmp.ne.s32.totalorder %s2736_s29, %s1966_s27  ;;  %s2047_s5 = smov [#allocation8]  }
  0x80   : > { %v517_v11 = vpack.c.bf16 %v503_v10, %v502_v9  ;;  %v505_v13 = vld [vmem:[#allocation7 + $0x28] sm:$0xff]  ;;  %v251_v14 = vld [vmem:[%s2263_s11 + $0x18] sm:$0xff]  ;;  %v484_v16 = vld [vmem:[%s2271_s9] sm:$0xff]  ;;  %s1970_s8 = sshll.u32 %s2047_s5, 4  ;;  %s1971_s8 = int_to_ptr.vmem [resolvable:$false] %s1970_s8 }
  0x81   : > { %253 = vxpose.xlu0.b32.cont [2/4] (short) (narrow) %v249_v2, 32  ;;  %1651 = vmatprep.subr.bf16.mxu0 %v516_v8  ;;  %v1553_v15 = vld [vmem:[%s2263_s11 + $0x38] sm:$0xff]  ;;  %v518_v17 = vpack.c.bf16 %v505_v13, %v504_v12  ;;  %v485_v18 = vld [vmem:[%s2271_s9 + $0x8] sm:$0xff]  ;;  %v506_v19 = vld [vmem:[#allocation7 + $0x30] sm:$0xff]  ;;  %p1968_p7 = pnand %p1967_p3, %p2164_p12  ;;  %s1972_s28 = scalar_lea.vmem %s1971_s8, 4096 }
  0x82   : > { %313 = vxpose.xlu1.b32.cont [2/4] (short) (narrow) %v1551_v3, 32  ;;  %1652 = vmatpush3.bf16.msra.mxu0 %v516_v8  ;;  %v507_v20 = vld [vmem:[#allocation7 + $0x38] sm:$0xff]  ;;  %v524_v21 = vpack.c.bf16 %v485_v18, %v484_v16  ;;  %v1554_v22 = vld [vmem:[%s2263_s11 + $0x40] sm:$0xff]  ;;  %v509_v26 = vld [vmem:[#allocation7 + $0x48] sm:$0xff]  ;;  %p1973_p1 = scmp.lt.s32.totalorder %s2736_s29, %s1971_s8  ;;  %p1974_p5 = scmp.lt.s32.totalorder %s1972_s28, %s1966_s27 }
  0x83   : > { %1653 = vmatprep.subr.bf16.mxu0 %v517_v11  ;;  %v1558_v23 = vld [vmem:[%s2263_s11 + $0x60] sm:$0xff]  ;;  %v519_v24 = vpack.c.bf16 %v507_v20, %v506_v19  ;;  %v1555_v27 = vld [vmem:[%s2263_s11 + $0x48] sm:$0xff]  ;;  %v510_v30 = vld [vmem:[#allocation7 + $0x50] sm:$0xff]  ;;  %p1969_p9 = pneg %p1968_p7 }
  0x84   : > { %1667 = vmatprep.mubr.bf16.mxu0 %v524_v21  ;;  %v508_v25 = vld [vmem:[#allocation7 + $0x40] sm:$0xff]  ;;  %v1559_v28 = vld [vmem:[%s2263_s11 + $0x68] sm:$0xff]  ;;  %v511_v31 = vld [vmem:[#allocation7 + $0x58] sm:$0xff]  ;;  %p1975_p2 = por %p1974_p5, %p1973_p1 }
  0x85   : > { %254 = vxpose.xlu0.b32.cont [3/4] (short) (narrow) %v250_v4, 32  ;;  %v520_v29 = vpack.c.bf16 %v509_v26, %v508_v25  ;;  %v1556_v32 = vld [vmem:[%s2263_s11 + $0x50] sm:$0xff]  ;;  %v521_v34 = vpack.c.bf16 %v511_v31, %v510_v30  ;;  %v512_v35 = vld [vmem:[#allocation7 + $0x60] sm:$0xff]  ;;  %v513_v36 = vld [vmem:[#allocation7 + $0x68] sm:$0xff] }
  0x86   : > { %314 = vxpose.xlu1.b32.cont [3/4] (short) (narrow) %v1552_v7, 32  ;;  %1654 = vmatpush3.bf16.msra.mxu0 %v517_v11  ;;  %v1560_v33 = vld [vmem:[%s2263_s11 + $0x70] sm:$0xff]  ;;  %v1557_v37 = vld [vmem:[%s2263_s11 + $0x58] sm:$0xff]  ;;  %v522_v39 = vpack.c.bf16 %v513_v36, %v512_v35  ;;  %v488_v45 = vld [vmem:[%s2271_s9 + $0x20] sm:$0xff]  ;;  %p1976_p6 = pnand %p1975_p2, %p1969_p9 }
  0x87   : > { %1655 = vmatprep.subr.bf16.mxu0 %v518_v17  ;;  %v1561_v38 = vld [vmem:[%s2263_s11 + $0x78] sm:$0xff]  ;;  %v514_v40 = vld [vmem:[#allocation7 + $0x70] sm:$0xff]  ;;  %v489_v46 = vld [vmem:[%s2271_s9 + $0x28] sm:$0xff] }
  0x88   : > { %v515_v41 = vld [vmem:[#allocation7 + $0x78] sm:$0xff]  ;;  %v486_v43 = vld [vmem:[%s2271_s9 + $0x10] sm:$0xff]  ;;  %v526_v48 = vpack.c.bf16 %v489_v46, %v488_v45  ;;  %v492_v51 = vld [vmem:[%s2271_s9 + $0x40] sm:$0xff] }
  0x89   : > { %255 = vxpose.xlu0.b32.end [4/4] (short) (narrow) %v251_v14, 32  ;;  %v523_v42 = vpack.c.bf16 %v515_v41, %v514_v40  ;;  %v487_v44 = vld [vmem:[%s2271_s9 + $0x18] sm:$0xff]  ;;  %v490_v49 = vld [vmem:[%s2271_s9 + $0x30] sm:$0xff]  ;;  %v493_v52 = vld [vmem:[%s2271_s9 + $0x48] sm:$0xff] }
  0x8a   : > { %315 = vxpose.xlu1.b32.end [4/4] (short) (narrow) %v1553_v15, 32  ;;  %1656 = vmatpush3.bf16.msra.mxu0 %v518_v17  ;;  %v525_v47 = vpack.c.bf16 %v487_v44, %v486_v43  ;;  %v491_v50 = vld [vmem:[%s2271_s9 + $0x38] sm:$0xff]  ;;  %v528_v54 = vpack.c.bf16 %v493_v52, %v492_v51  ;;  %v494_v55 = vld [vmem:[%s2271_s9 + $0x50] sm:$0xff]  ;;  %v496_v57 = vld [vmem:[%s2271_s9 + $0x60] sm:$0xff] }
  0x8b   : > { %1657 = vmatprep.subr.bf16.mxu0 %v519_v24  ;;  %v527_v53 = vpack.c.bf16 %v491_v50, %v490_v49  ;;  %v495_v56 = vld [vmem:[%s2271_s9 + $0x58] sm:$0xff]  ;;  %v497_v58 = vld [vmem:[%s2271_s9 + $0x68] sm:$0xff]  ;;  %v498_v61 = vld [vmem:[%s2271_s9 + $0x70] sm:$0xff] }
  0x8c   : > { %v529_v59 = vpack.c.bf16 %v495_v56, %v494_v55  ;;  %v530_v60 = vpack.c.bf16 %v497_v58, %v496_v57  ;;  %v499_v62 = vld [vmem:[%s2271_s9 + $0x78] sm:$0xff]  ;;  %v988_v40 = vld [vmem:[#allocation7 + $0x90] sm:$0xff]  ;;  %v990_v44 = vld [vmem:[#allocation7 + $0xa0] sm:$0xff] }
  0x8d   : > { %371 = vxpose.xlu0.b32.start [1/4] (short) (narrow) %v1554_v22, 32  ;;  %v531_v63 = vpack.c.bf16 %v499_v62, %v498_v61  ;;  %v991_v45 = vld [vmem:[#allocation7 + $0xa8] sm:$0xff] }
  0x8e   : > { %430 = vxpose.xlu1.b32.start [1/4] (short) (narrow) %v1558_v23, 32  ;;  %1658 = vmatpush3.bf16.msra.mxu0 %v519_v24  ;;  %v1004_v46 = vpack.c.bf16 %v991_v45, %v990_v44 }
  0x8f   : > { %1659 = vmatprep.subr.bf16.mxu0 %v520_v29 }
  0x91   : > { %372 = vxpose.xlu0.b32.cont [2/4] (short) (narrow) %v1555_v27, 32 }
  0x92   : > { %431 = vxpose.xlu1.b32.cont [2/4] (short) (narrow) %v1559_v28, 32  ;;  %1660 = vmatpush3.bf16.msra.mxu0 %v520_v29 }
  0x93   : > { %1661 = vmatprep.subr.bf16.mxu0 %v521_v34 }
  0x95   : > { %373 = vxpose.xlu0.b32.cont [3/4] (short) (narrow) %v1556_v32, 32 }
  0x96   : > { %432 = vxpose.xlu1.b32.cont [3/4] (short) (narrow) %v1560_v33, 32  ;;  %1662 = vmatpush3.bf16.msra.mxu0 %v521_v34 }
  0x97   : > { %1663 = vmatprep.subr.bf16.mxu0 %v522_v39 }
  0x99   : > { %374 = vxpose.xlu0.b32.end [4/4] (short) (narrow) %v1557_v37, 32 }
  0x9a   : > { %433 = vxpose.xlu1.b32.end [4/4] (short) (narrow) %v1561_v38, 32  ;;  %1664 = vmatpush3.bf16.msra.mxu0 %v522_v39  ;;  %v986_v38 = vld [vmem:[#allocation7 + $0x80] sm:$0xff]  ;;  %v987_v39 = vld [vmem:[#allocation7 + $0x88] sm:$0xff] }
  0x9b   : > { %1665 = vmatprep.subr.bf16.mxu0 %v523_v42  ;;  %v1002_v41 = vpack.c.bf16 %v987_v39, %v986_v38 }
  0x9e   : > { %1666 = vmatpush3.bf16.msra.mxu0 %v523_v42  ;;  %v989_v42 = vld [vmem:[#allocation7 + $0x98] sm:$0xff] }
  0x9f   : > { %v1003_v43 = vpack.c.bf16 %v989_v42, %v988_v40  ;;  %1715 = vmatprep.subr.bf16.mxu0 %v1002_v41 }
  0xa1   : > { %1668 = vmatmul.mubr.bf16.vlgmr.msra.gmra.mrb[0].mxu0 %v525_v47 }
  0xa2   : > { %1671 = vmatprep.mubr.bf16.mxu0 %v526_v48  ;;  %1716 = vmatpush3.bf16.msra.mxu0 %v1002_v41 }
  0xa3   : > { %1717 = vmatprep.subr.bf16.mxu0 %v1003_v43 }
  0xa6   : > { %1718 = vmatpush3.bf16.msra.mxu0 %v1003_v43 }
  0xa7   : > { %1719 = vmatprep.subr.bf16.mxu0 %v1004_v46 }
  0xa9   : > { %1672 = vmatmul.mubr.bf16.gmra.mrb[4].mxu0 %v527_v53 }
  0xaa   : > { %1675 = vmatprep.mubr.bf16.mxu0 %v528_v54  ;;  %1720 = vmatpush3.bf16.msra.mxu0 %v1004_v46 }
  0xb1   : > { %1676 = vmatmul.mubr.bf16.gmra.mrb[8].mxu0 %v529_v59 }
  0xb2   : > { %1679 = vmatprep.mubr.bf16.mxu0 %v530_v60 }
  0xb9   : > { %1680 = vmatmul.mubr.bf16.gmra.mrb[12].mxu0 %v531_v63 }
  0xfd   : > { %v268_v0 = vpop.trf.xlu0 }
  0xfe   : > { %v328_v1 = vpop.trf.xlu1  ;;  %v285_v2 = vsel %vm284_vm0, %v268_v0, 0.0 }
  0xff   : > { %286 = vadd.xlane.f32.xlu0 %v285_v2  ;;  %v344_v3 = vsel %vm284_vm0, %v328_v1, 0.0 }
 0x101   : > { %v269_v4 = vpop.trf.xlu0 }
 0x102   : > { %v329_v5 = vpop.trf.xlu1  ;;  %v288_v6 = vsel %vm284_vm0, %v269_v4, 0.0  ;;  %v2318_v8 = vpack.c.bf16 %v269_v4, %v268_v0 }
 0x103   : > { %v2316_v7 = vpack.c.bf16 %v329_v5, %v328_v1  ;;  %289 = vadd.xlane.f32.xlu1 %v288_v6  ;;  %345 = vadd.xlane.f32.xlu0 %v344_v3  ;;  %v347_v20 = vsel %vm284_vm0, %v329_v5, 0.0 }
 0x104   : > { %1687 = vmatprep.mubr.msk.bf16.mxu1 %vm284_vm0, %v2318_v8 }
 0x105   : > { %v270_v9 = vpop.trf.xlu0 }
 0x106   : > { %v330_v10 = vpop.trf.xlu1  ;;  %v291_v11 = vsel %vm284_vm0, %v270_v9, 0.0 }
 0x107   : > { %v350_v12 = vsel %vm284_vm0, %v330_v10, 0.0  ;;  %292 = vadd.xlane.f32.xlu1 %v291_v11 }
 0x108   : > { %351 = vadd.xlane.f32.xlu0 %v350_v12 }
 0x109   : > { %v271_v13 = vpop.trf.xlu0 }
 0x10a   : > { %v331_v14 = vpop.trf.xlu1  ;;  %v2324_v15 = vpack.c.bf16 %v271_v13, %v270_v9  ;;  %v294_v16 = vsel %vm284_vm0, %v271_v13, 0.0 }
 0x10b   : > { %v2327_v17 = vpack.c.bf16 %v331_v14, %v330_v10  ;;  %295 = vadd.xlane.f32.xlu1 %v294_v16  ;;  %v353_v22 = vsel %vm284_vm0, %v331_v14, 0.0 }
 0x10d   : > { %v387_v18 = vpop.trf.xlu0 }
 0x10e   : > { %v446_v19 = vpop.trf.xlu1  ;;  %v403_v21 = vsel %vm284_vm0, %v387_v18, 0.0 }
 0x10f   : > { %348 = vadd.xlane.f32.xlu1 %v347_v20  ;;  %404 = vadd.xlane.f32.xlu0 %v403_v21  ;;  %v462_v32 = vsel %vm284_vm0, %v446_v19, 0.0 }
 0x111   : > { %v388_v23 = vpop.trf.xlu0 }
 0x112   : > { %v447_v24 = vpop.trf.xlu1  ;;  %v2332_v25 = vpack.c.bf16 %v388_v23, %v387_v18  ;;  %v406_v28 = vsel %vm284_vm0, %v388_v23, 0.0 }
 0x113   : > { %v2334_v26 = vpack.c.bf16 %v447_v24, %v446_v19  ;;  %354 = vadd.xlane.f32.xlu1 %v353_v22  ;;  %v465_v35 = vsel %vm284_vm0, %v447_v24, 0.0 }
 0x115   : > { %v2336_v27 = vpop.trf.xlu0 }
 0x116   : > { %v409_v29 = vsel %vm284_vm0, %v2336_v27, 0.0  ;;  %v2341_v30 = vpop.trf.xlu1 }
 0x117   : > { %407 = vadd.xlane.f32.xlu1 %v406_v28  ;;  %410 = vadd.xlane.f32.xlu0 %v409_v29  ;;  %v468_v34 = vsel %vm284_vm0, %v2341_v30, 0.0 }
 0x119   : > { %v2343_v31 = vpop.trf.xlu0 }
 0x11a   : > { %v412_v33 = vsel %vm284_vm0, %v2343_v31, 0.0  ;;  %v2351_v36 = vpop.trf.xlu1 }
 0x11b   : > { %463 = vadd.xlane.f32.xlu0 %v462_v32  ;;  %413 = vadd.xlane.f32.xlu1 %v412_v33  ;;  %v471_v37 = vsel %vm284_vm0, %v2351_v36, 0.0 }
 0x11f   : > { %469 = vadd.xlane.f32.xlu0 %v468_v34  ;;  %466 = vadd.xlane.f32.xlu1 %v465_v35 }
 0x123   : > { %472 = vadd.xlane.f32.xlu1 %v471_v37 }
 0x174   : > { %v2355_v47 = vpop.f32.mrb[0].mxu0 }
 0x175   : > { %v2357_v48 = vpop.f32.mrb[1].mxu0 }
 0x176   : > { %v2359_v49 = vpop.f32.mrb[2].mxu0 }
 0x177   : > { %v2361_v50 = vpop.f32.mrb[3].mxu0 }
 0x17c   : > { %v2363_v51 = vpop.f32.mrb[4].mxu0 }
 0x17d   : > { %v2365_v52 = vpop.f32.mrb[5].mxu0 }
 0x17e   : > { %v2367_v53 = vpop.f32.mrb[6].mxu0 }
 0x17f   : > { %v2369_v54 = vpop.f32.mrb[7].mxu0 }
 0x184   : > { %v2371_v55 = vpop.f32.mrb[8].mxu0 }
 0x185   : > { %v2373_v56 = vpop.f32.mrb[9].mxu0 }
 0x186   : > { %v2375_v57 = vpop.f32.mrb[10].mxu0 }
 0x187   : > { %v2377_v58 = vpop.f32.mrb[11].mxu0 }
 0x18c   : > { %v287_v59 = vpop.xlane.xlu0 %286  ;;  %v2379_v63 = vpop.f32.mrb[12].mxu0 }
 0x18d   : > { %v297_v60 = vadd.f32 1.0, %v287_v59  ;;  %v2381_v1 = vpop.f32.mrb[13].mxu0 }
 0x18e   : > { %v2383_v2 = vpop.f32.mrb[14].mxu0 }
 0x18f   : > { %1846 = vrsqrt.f32 %v297_v60  ;;  %v2385_v5 = vpop.f32.mrb[15].mxu0 }
 0x190   : > { %v290_v61 = vpop.xlane.xlu1 %289  ;;  %v346_v0 = vpop.xlane.xlu0 %345 }
 0x191   : > { %v298_v62 = vadd.f32 1.0, %v290_v61  ;;  %v356_v10 = vadd.f32 1.0, %v346_v0 }
 0x193   : > { %1848 = vrsqrt.f32 %v298_v62 }
 0x194   : > { %v293_v3 = vpop.xlane.xlu1 %292 }
 0x195   : > { %v299_v4 = vadd.f32 1.0, %v293_v3  ;;  %v352_v6 = vpop.xlane.xlu0 %351 }
 0x196   : > { %v358_v18 = vadd.f32 1.0, %v352_v6 }
 0x197   : > { %1850 = vrsqrt.f32 %v299_v4 }
 0x198   : > { %v296_v9 = vpop.xlane.xlu1 %295 }
 0x199   : > { %v300_v11 = vadd.f32 1.0, %v296_v9  ;;  %v2387_v12 = vpop.eup %1846 }
 0x19a   : > { %v629_v19 = vmul.f32 %v2387_v12, %v2357_v48 }
 0x19b   : > { %1852 = vrsqrt.f32 %v300_v11 }
 0x19c   : > { %v349_v13 = vpop.xlane.xlu1 %348  ;;  %1854 = vrsqrt.f32 %v356_v10  ;;  %v405_v20 = vpop.xlane.xlu0 %404 }
 0x19d   : > { %v2389_v14 = vpop.eup %1848  ;;  %v357_v16 = vadd.f32 1.0, %v349_v13  ;;  %v415_v24 = vadd.f32 1.0, %v405_v20 }
 0x19e   : > { %v630_v21 = vmul.f32 %v2389_v14, %v2361_v50 }
 0x19f   : > { %1856 = vrsqrt.f32 %v357_v16 }
 0x1a0   : > { %v355_v22 = vpop.xlane.xlu1 %354  ;;  %v633_v23 = vpack.c.bf16 %v630_v21, %v629_v19  ;;  %1858 = vrsqrt.f32 %v358_v18 }
 0x1a1   : > { %v359_v28 = vadd.f32 1.0, %v355_v22  ;;  %v2395_v29 = vpop.eup %1850 }
 0x1a2   : > { %1683 = vmatprep.subr.bf16.mxu1 %v633_v23  ;;  %v631_v38 = vmul.f32 %v2395_v29, %v2355_v47 }
 0x1a3   : > { %1860 = vrsqrt.f32 %v359_v28  ;;  %1684 = vmatpush3.bf16.msra.mxu1 %v633_v23 }
 0x1a4   : > { %v408_v32 = vpop.xlane.xlu1 %407  ;;  %v411_v33 = vpop.xlane.xlu0 %410  ;;  %1862 = vrsqrt.f32 %v415_v24 }
 0x1a5   : > { %v2397_v34 = vpop.eup %1852  ;;  %v416_v35 = vadd.f32 1.0, %v408_v32  ;;  %v417_v37 = vadd.f32 1.0, %v411_v33 }
 0x1a6   : > { %v632_v39 = vmul.f32 %v2397_v34, %v2359_v49  ;;  %v2403_v40 = vpop.eup %1854 }
 0x1a7   : > { %1864 = vrsqrt.f32 %v416_v35  ;;  %v714_v59 = vmul.f32 %v2403_v40, %v2365_v52 }
 0x1a8   : > { %v634_v41 = vpack.c.bf16 %v632_v39, %v631_v38  ;;  %v414_v42 = vpop.xlane.xlu1 %413  ;;  %v464_v43 = vpop.xlane.xlu0 %463  ;;  %1866 = vrsqrt.f32 %v417_v37 }
 0x1a9   : > { %v2405_v44 = vpop.eup %1856  ;;  %v418_v45 = vadd.f32 1.0, %v414_v42  ;;  %v474_v46 = vadd.f32 1.0, %v464_v43  ;;  %v2455_v43 = vpack.c.bf16 %v2343_v31, %v2336_v27  ;;  %v2469_v27 = vpack.c.bf16 %v2351_v36, %v2341_v30  ;;  %v992_v31 = vld [vmem:[#allocation7 + $0xb0] sm:$0xff]  ;;  %v998_v36 = vld [vmem:[#allocation7 + $0xe0] sm:$0xff] }
 0x1aa   : > { %v715_v60 = vmul.f32 %v2405_v44, %v2369_v54  ;;  %1685 = vmatprep.subr.bf16.mxu1 %v634_v41  ;;  %v2411_v61 = vpop.eup %1858 }
 0x1ab   : > { %1868 = vrsqrt.f32 %v418_v45  ;;  %1686 = vmatpush3.bf16.msra.mxu1 %v634_v41  ;;  %v716_v10 = vmul.f32 %v2411_v61, %v2363_v51 }
 0x1ac   : > { %v718_v62 = vpack.c.bf16 %v715_v60, %v714_v59  ;;  %v467_v0 = vpop.xlane.xlu1 %466  ;;  %v470_v3 = vpop.xlane.xlu0 %469  ;;  %1870 = vrsqrt.f32 %v474_v46 }
 0x1ad   : > { %v2413_v4 = vpop.eup %1860  ;;  %v475_v6 = vadd.f32 1.0, %v467_v0  ;;  %v476_v9 = vadd.f32 1.0, %v470_v3  ;;  %v993_v0 = vld [vmem:[#allocation7 + $0xb8] sm:$0xff] }
 0x1ae   : > { %v717_v11 = vmul.f32 %v2413_v4, %v2367_v53  ;;  %1688 = vmatmul.mubr.msk.bf16.vlgmr.msra.gmra.mrb[0].mxu1 %vm284_vm0, %v2324_v15  ;;  %1691 = vmatprep.subr.bf16.mxu1 %v718_v62  ;;  %v2421_v13 = vpop.eup %1862  ;;  %v1005_v3 = vpack.c.bf16 %v993_v0, %v992_v31 }
 0x1af   : > { %1872 = vrsqrt.f32 %v475_v6  ;;  %1692 = vmatpush3.bf16.msra.mxu1 %v718_v62  ;;  %1695 = vmatprep.mubr.msk.bf16.mxu1 %vm284_vm0, %v2316_v7  ;;  %v799_v21 = vmul.f32 %v2421_v13, %v2373_v56  ;;  %v994_v6 = vld [vmem:[#allocation7 + $0xc0] sm:$0xff] }
 0x1b0   : > { %v719_v16 = vpack.c.bf16 %v717_v11, %v716_v10  ;;  %v473_v18 = vpop.xlane.xlu1 %472  ;;  %1874 = vrsqrt.f32 %v476_v9  ;;  %1721 = vmatprep.subr.bf16.mxu0 %v1005_v3  ;;  %v995_v9 = vld [vmem:[#allocation7 + $0xc8] sm:$0xff]  ;;  %v996_v11 = vld [vmem:[#allocation7 + $0xd0] sm:$0xff] }
 0x1b1   : > { %v2425_v19 = vpop.eup %1864  ;;  %v477_v20 = vadd.f32 1.0, %v473_v18  ;;  %1722 = vmatpush3.bf16.msra.mxu0 %v1005_v3  ;;  %v1006_v10 = vpack.c.bf16 %v995_v9, %v994_v6  ;;  %v999_v18 = vld [vmem:[#allocation7 + $0xe8] sm:$0xff] }
 0x1b2   : > { %v800_v22 = vmul.f32 %v2425_v19, %v2377_v58  ;;  %1693 = vmatprep.subr.bf16.mxu1 %v719_v16  ;;  %v2431_v23 = vpop.eup %1866 }
 0x1b3   : > { %1876 = vrsqrt.f32 %v477_v20  ;;  %1694 = vmatpush3.bf16.msra.mxu1 %v719_v16  ;;  %v801_v32 = vmul.f32 %v2431_v23, %v2371_v55  ;;  %1723 = vmatprep.subr.bf16.mxu0 %v1006_v10  ;;  %v997_v16 = vld [vmem:[#allocation7 + $0xd8] sm:$0xff]  ;;  %v1008_v20 = vpack.c.bf16 %v999_v18, %v998_v36  ;;  %v2513_v36 = vmul.f32 %v2413_v4, %v2413_v4 }
 0x1b4   : > { %v803_v24 = vpack.c.bf16 %v800_v22, %v799_v21  ;;  %v1007_v30 = vpack.c.bf16 %v997_v16, %v996_v11  ;;  %v1001_v21 = vld [vmem:[#allocation7 + $0xf8] sm:$0xff]  ;;  %v2505_v16 = vmul.f32 %v2411_v61, %v2411_v61 }
 0x1b5   : > { %v2433_v28 = vpop.eup %1868  ;;  %1724 = vmatpush3.bf16.msra.mxu0 %v1006_v10 }
 0x1b6   : > { %v802_v33 = vmul.f32 %v2433_v28, %v2375_v57  ;;  %1696 = vmatmul.mubr.msk.bf16.vlgmr.msra.gmra.mrb[4].mxu1 %vm284_vm0, %v2327_v17  ;;  %1699 = vmatprep.subr.bf16.mxu1 %v803_v24  ;;  %v2441_v35 = vpop.eup %1870 }
 0x1b7   : > { %1700 = vmatpush3.bf16.msra.mxu1 %v803_v24  ;;  %1703 = vmatprep.mubr.msk.bf16.mxu1 %vm284_vm0, %v2332_v25  ;;  %v884_v39 = vmul.f32 %v2441_v35, %v2381_v1  ;;  %v2477_v24 = vmul.f32 %v2395_v29, %v2395_v29 }
 0x1b8   : > { %v804_v37 = vpack.c.bf16 %v802_v33, %v801_v32  ;;  %1725 = vmatprep.subr.bf16.mxu0 %v1007_v30  ;;  %v2481_v32 = vmul.f32 %v2387_v12, %v2387_v12  ;;  %v2485_v33 = vmul.f32 %v2397_v34, %v2397_v34 }
 0x1b9   : > { %v2445_v38 = vpop.eup %1872  ;;  %1726 = vmatpush3.bf16.msra.mxu0 %v1007_v30  ;;  %v2509_v30 = vmul.f32 %v2403_v40, %v2403_v40 }
 0x1ba   : > { %v885_v41 = vmul.f32 %v2445_v38, %v2385_v5  ;;  %1701 = vmatprep.subr.bf16.mxu1 %v804_v37  ;;  %v2451_v42 = vpop.eup %1874  ;;  %1727 = vmatprep.subr.bf16.mxu0 %v1008_v20  ;;  %v701_v0 = vmul.f32 %v2359_v49, %v2485_v33 }
 0x1bb   : > { %1702 = vmatpush3.bf16.msra.mxu1 %v804_v37  ;;  %v886_v59 = vmul.f32 %v2451_v42, %v2379_v63  ;;  %v2489_v37 = vmul.f32 %v2389_v14, %v2389_v14 }
 0x1bc   : > { %v888_v45 = vpack.c.bf16 %v885_v41, %v884_v39  ;;  %v700_v41 = vmul.f32 %v2355_v47, %v2477_v24 }
 0x1bd   : > { %v2457_v46 = vpop.eup %1876  ;;  %1728 = vmatpush3.bf16.msra.mxu0 %v1008_v20  ;;  %v699_v10 = vmul.f32 %v2489_v37, %v2361_v50  ;;  %v2517_v50 = vmul.f32 %v2405_v44, %v2405_v44 }
 0x1be   : > { %v887_v60 = vmul.f32 %v2457_v46, %v2383_v2  ;;  %1704 = vmatmul.mubr.msk.bf16.vlgmr.msra.gmra.mrb[8].mxu1 %vm284_vm0, %v2455_v43  ;;  %1707 = vmatprep.subr.bf16.mxu1 %v888_v45 }
 0x1bf   : > { %1708 = vmatpush3.bf16.msra.mxu1 %v888_v45  ;;  %1711 = vmatprep.mubr.msk.bf16.mxu1 %vm284_vm0, %v2334_v26 }
 0x1c0   : > { %v889_v62 = vpack.c.bf16 %v887_v60, %v886_v59  ;;  %v698_v60 = vmul.f32 %v2481_v32, %v2357_v48 }
 0x1c2   : > { %1709 = vmatprep.subr.bf16.mxu1 %v889_v62 }
 0x1c3   : > { %1710 = vmatpush3.bf16.msra.mxu1 %v889_v62 }
 0x1c6   : > { %1712 = vmatmul.mubr.msk.bf16.vlgmr.msra.gmra.mrb[12].mxu1 %vm284_vm0, %v2469_v27 }
 0x1c7   : > { %1751 = vmatprep.mubr.msk.bf16.mxu1 %vm284_vm0, %v2318_v8  ;;  %v1000_v8 = vld [vmem:[#allocation7 + $0xf0] sm:$0xff] }
 0x1c8   : > { %v1009_v22 = vpack.c.bf16 %v1001_v21, %v1000_v8 }
 0x1ca   : > { %1729 = vmatprep.subr.bf16.mxu0 %v1009_v22 }
 0x1cb   : > { %1730 = vmatpush3.bf16.msra.mxu0 %v1009_v22 }
 0x281   : > { %v1689_v39 = vpop.f32.mrb[0].mxu1 }
 0x282   : > { %v692_v45 = vmul.f32 %v2395_v29, %v1689_v39  ;;  %v675_v59 = vpop.f32.mrb[1].mxu1  ;;  %v785_v39 = vmul.f32 %v2363_v51, %v2505_v16  ;;  %v784_v51 = vmul.f32 %v2517_v50, %v2369_v54 }
 0x283   : > { %v690_v62 = vmul.f32 %v2387_v12, %v675_v59  ;;  %v1690_v31 = vpop.f32.mrb[2].mxu1 }
 0x284   : > { %v704_v3 = vadd.f32 %v700_v41, %v692_v45  ;;  %v693_v6 = vmul.f32 %v2397_v34, %v1690_v31  ;;  %v678_v9 = vpop.f32.mrb[3].mxu1 }
 0x285   : > { %v702_v47 = vadd.f32 %v698_v60, %v690_v62  ;;  %v691_v11 = vmul.f32 %v2389_v14, %v678_v9  ;;  %v783_v60 = vmul.f32 %v2509_v30, %v2365_v52  ;;  %v2533_v52 = vmul.f32 %v2431_v23, %v2431_v23 }
 0x286   : > { %v705_v48 = vadd.f32 %v701_v0, %v693_v6  ;;  %v708_v18 = vmax.f32 %v704_v3, 0.0  ;;  %v786_v3 = vmul.f32 %v2367_v53, %v2513_v36  ;;  %v2537_v53 = vmul.f32 %v2421_v13, %v2421_v13 }
 0x287   : > { %v703_v49 = vadd.f32 %v699_v10, %v691_v11  ;;  %v706_v8 = vmax.f32 %v702_v47, 0.0 }
 0x288   : > { %v709_v20 = vmax.f32 %v705_v48, 0.0 }
 0x289   : > { %v707_v21 = vmax.f32 %v703_v49, 0.0  ;;  %v1697_v22 = vpop.f32.mrb[4].mxu1 }
 0x28a   : > { %v777_v41 = vmul.f32 %v2411_v61, %v1697_v22  ;;  %v760_v45 = vpop.f32.mrb[5].mxu1  ;;  %v1011_v59 = vpack.c.bf16 %v709_v20, %v708_v18  ;;  %v2541_v18 = vmul.f32 %v2433_v28, %v2433_v28 }
 0x28b   : > { %v775_v62 = vmul.f32 %v2403_v40, %v760_v45  ;;  %v1698_v31 = vpop.f32.mrb[6].mxu1  ;;  %v1010_v0 = vpack.c.bf16 %v707_v21, %v706_v8  ;;  %v2545_v8 = vmul.f32 %v2425_v19, %v2425_v19 }
 0x28c   : > { %v789_v6 = vadd.f32 %v785_v39, %v777_v41  ;;  %v778_v9 = vmul.f32 %v2413_v4, %v1698_v31  ;;  %v763_v10 = vpop.f32.mrb[7].mxu1  ;;  %v870_v41 = vmul.f32 %v2371_v55, %v2533_v52 }
 0x28d   : > { %v787_v47 = vadd.f32 %v783_v60, %v775_v62  ;;  %v776_v11 = vmul.f32 %v2405_v44, %v763_v10  ;;  %1731 = vmatprep.mubr.bf16.mxu0 %v1010_v0  ;;  %v868_v62 = vmul.f32 %v2537_v53, %v2373_v56  ;;  %v869_v55 = vmul.f32 %v2545_v8, %v2377_v58 }
 0x28e   : > { %v790_v48 = vadd.f32 %v786_v3, %v778_v9  ;;  %1732 = vmatmul.mubr.bf16.vlgmr.msra.gmra.mrb[16].mxu0 %v1011_v59  ;;  %v793_v54 = vmax.f32 %v789_v6, 0.0  ;;  %v871_v6 = vmul.f32 %v2375_v57, %v2541_v18  ;;  %v2561_v56 = vmul.f32 %v2451_v42, %v2451_v42 }
 0x28f   : > { %v788_v49 = vadd.f32 %v784_v51, %v776_v11  ;;  %v791_v21 = vmax.f32 %v787_v47, 0.0  ;;  %v2565_v57 = vmul.f32 %v2441_v35, %v2441_v35 }
 0x290   : > { %v794_v20 = vmax.f32 %v790_v48, 0.0 }
 0x291   : > { %v792_v22 = vmax.f32 %v788_v49, 0.0  ;;  %v1705_v39 = vpop.f32.mrb[8].mxu1 }
 0x292   : > { %v862_v45 = vmul.f32 %v2431_v23, %v1705_v39  ;;  %v845_v59 = vpop.f32.mrb[9].mxu1  ;;  %v1013_v60 = vpack.c.bf16 %v794_v20, %v793_v54  ;;  %v2569_v54 = vmul.f32 %v2457_v46, %v2457_v46 }
 0x293   : > { %v860_v31 = vmul.f32 %v2421_v13, %v845_v59  ;;  %v1706_v0 = vpop.f32.mrb[10].mxu1  ;;  %v1012_v3 = vpack.c.bf16 %v792_v22, %v791_v21  ;;  %v2573_v21 = vmul.f32 %v2445_v38, %v2445_v38 }
 0x294   : > { %v874_v9 = vadd.f32 %v870_v41, %v862_v45  ;;  %v863_v10 = vmul.f32 %v2433_v28, %v1706_v0  ;;  %v848_v51 = vpop.f32.mrb[11].mxu1  ;;  %v955_v45 = vmul.f32 %v2379_v63, %v2561_v56 }
 0x295   : > { %v872_v47 = vadd.f32 %v868_v62, %v860_v31  ;;  %v861_v11 = vmul.f32 %v2425_v19, %v848_v51  ;;  %1735 = vmatprep.mubr.bf16.mxu0 %v1012_v3  ;;  %v953_v31 = vmul.f32 %v2565_v57, %v2381_v1  ;;  %v954_v63 = vmul.f32 %v2573_v21, %v2385_v5 }
 0x296   : > { %v875_v48 = vadd.f32 %v871_v6, %v863_v10  ;;  %1736 = vmatmul.mubr.bf16.gmra.mrb[20].mxu0 %v1013_v60  ;;  %v878_v58 = vmax.f32 %v874_v9, 0.0  ;;  %v956_v9 = vmul.f32 %v2383_v2, %v2569_v54 }
 0x297   : > { %v873_v49 = vadd.f32 %v869_v55, %v861_v11  ;;  %v876_v22 = vmax.f32 %v872_v47, 0.0 }
 0x298   : > { %v879_v20 = vmax.f32 %v875_v48, 0.0 }
 0x299   : > { %v877_v39 = vmax.f32 %v873_v49, 0.0  ;;  %v1713_v41 = vpop.f32.mrb[12].mxu1 }
 0x29a   : > { %v947_v59 = vmul.f32 %v2451_v42, %v1713_v41  ;;  %v930_v60 = vpop.f32.mrb[13].mxu1  ;;  %v1015_v62 = vpack.c.bf16 %v879_v20, %v878_v58 }
 0x29b   : > { %v945_v0 = vmul.f32 %v2441_v35, %v930_v60  ;;  %v1714_v3 = vpop.f32.mrb[14].mxu1  ;;  %v1014_v6 = vpack.c.bf16 %v877_v39, %v876_v22 }
 0x29c   : > { %v959_v10 = vadd.f32 %v955_v45, %v947_v59  ;;  %v948_v51 = vmul.f32 %v2457_v46, %v1714_v3  ;;  %v933_v55 = vpop.f32.mrb[15].mxu1 }
 0x29d   : > { %v957_v47 = vadd.f32 %v953_v31, %v945_v0  ;;  %v946_v11 = vmul.f32 %v2445_v38, %v933_v55  ;;  %1739 = vmatprep.mubr.bf16.mxu0 %v1014_v6 }
 0x29e   : > { %v960_v48 = vadd.f32 %v956_v9, %v948_v51  ;;  %1740 = vmatmul.mubr.bf16.gmra.mrb[24].mxu0 %v1015_v62  ;;  %v963_v49 = vmax.f32 %v959_v10, 0.0 }
 0x29f   : > { %v958_v1 = vadd.f32 %v954_v63, %v946_v11  ;;  %v961_v20 = vmax.f32 %v957_v47, 0.0 }
 0x2a0   : > { %v964_v58 = vmax.f32 %v960_v48, 0.0 }
 0x2a1   : > { %v962_v22 = vmax.f32 %v958_v1, 0.0 }
 0x2a2   : > { %v1017_v39 = vpack.c.bf16 %v964_v58, %v963_v49 }
 0x2a3   : > { %v1016_v2 = vpack.c.bf16 %v962_v22, %v961_v20 }
 0x2a5   : > { %1743 = vmatprep.mubr.bf16.mxu0 %v1016_v2 }
 0x2a6   : > { %1744 = vmatmul.mubr.bf16.gmra.mrb[28].mxu0 %v1017_v39 }
 0x361   : > { %v2587_v41 = vpop.f32.mrb[16].mxu0 }
 0x362   : > { %v2589_v45 = vpop.f32.mrb[17].mxu0  ;;  %v1117_v59 = vmul.f32 %v2395_v29, %v2587_v41 }
 0x363   : > { %v2591_v5 = vpop.f32.mrb[18].mxu0  ;;  %v1115_v31 = vmul.f32 %v2387_v12, %v2589_v45 }
 0x364   : > { %v1118_v60 = vmul.f32 %v2397_v34, %v2591_v5  ;;  %v2597_v62 = vpop.f32.mrb[19].mxu0 }
 0x365   : > { %v1116_v0 = vmul.f32 %v2389_v14, %v2597_v62 }
 0x366   : > { %v1120_v3 = vpack.c.bf16 %v1118_v60, %v1117_v59 }
 0x367   : > { %v1119_v6 = vpack.c.bf16 %v1116_v0, %v1115_v31 }
 0x369   : > { %v2603_v9 = vpop.f32.mrb[20].mxu0  ;;  %1747 = vmatprep.subr.bf16.mxu1 %v1119_v6 }
 0x36a   : > { %v2605_v10 = vpop.f32.mrb[21].mxu0  ;;  %1748 = vmatpush3.bf16.msra.mxu1 %v1119_v6  ;;  %v1192_v55 = vmul.f32 %v2411_v61, %v2603_v9 }
 0x36b   : > { %v2607_v51 = vpop.f32.mrb[22].mxu0  ;;  %1749 = vmatprep.subr.bf16.mxu1 %v1120_v3  ;;  %v1190_v11 = vmul.f32 %v2403_v40, %v2605_v10 }
 0x36c   : > { %v1193_v63 = vmul.f32 %v2413_v4, %v2607_v51  ;;  %v2613_v47 = vpop.f32.mrb[23].mxu0 }
 0x36d   : > { %v1191_v48 = vmul.f32 %v2405_v44, %v2613_v47 }
 0x36e   : > { %v1195_v1 = vpack.c.bf16 %v1193_v63, %v1192_v55  ;;  %1750 = vmatpush3.bf16.msra.mxu1 %v1120_v3 }
 0x36f   : > { %v1194_v49 = vpack.c.bf16 %v1191_v48, %v1190_v11 }
 0x371   : > { %v2619_v58 = vpop.f32.mrb[24].mxu0  ;;  %1752 = vmatmul.mubr.msk.bf16.vlgmr.msra.gmra.mrb[16].mxu1 %vm284_vm0, %v2324_v15  ;;  %1755 = vmatprep.subr.bf16.mxu1 %v1194_v49 }
 0x372   : > { %v2623_v20 = vpop.f32.mrb[25].mxu0  ;;  %1756 = vmatpush3.bf16.msra.mxu1 %v1194_v49  ;;  %1759 = vmatprep.mubr.msk.bf16.mxu1 %vm284_vm0, %v2316_v7  ;;  %v1267_v39 = vmul.f32 %v2431_v23, %v2619_v58 }
 0x373   : > { %v2627_v22 = vpop.f32.mrb[26].mxu0  ;;  %1757 = vmatprep.subr.bf16.mxu1 %v1195_v1  ;;  %v1265_v15 = vmul.f32 %v2421_v13, %v2623_v20 }
 0x374   : > { %v1268_v2 = vmul.f32 %v2433_v28, %v2627_v22  ;;  %v2633_v59 = vpop.f32.mrb[27].mxu0 }
 0x375   : > { %v1266_v60 = vmul.f32 %v2425_v19, %v2633_v59 }
 0x376   : > { %v1270_v31 = vpack.c.bf16 %v1268_v2, %v1267_v39  ;;  %1758 = vmatpush3.bf16.msra.mxu1 %v1195_v1  ;;  %v1176_v39 = vmul.f32 %v2587_v41, %v2477_v24  ;;  %v1175_v24 = vmul.f32 %v2597_v62, %v2489_v37  ;;  %v1251_v37 = vmul.f32 %v2603_v9, %v2505_v16 }
 0x377   : > { %v1269_v7 = vpack.c.bf16 %v1266_v60, %v1265_v15 }
 0x379   : > { %v2639_v0 = vpop.f32.mrb[28].mxu0  ;;  %1760 = vmatmul.mubr.msk.bf16.vlgmr.msra.gmra.mrb[20].mxu1 %vm284_vm0, %v2327_v17  ;;  %1763 = vmatprep.subr.bf16.mxu1 %v1269_v7 }
 0x37a   : > { %v2643_v3 = vpop.f32.mrb[29].mxu0  ;;  %1764 = vmatpush3.bf16.msra.mxu1 %v1269_v7  ;;  %1767 = vmatprep.mubr.msk.bf16.mxu1 %vm284_vm0, %v2332_v25  ;;  %v1342_v55 = vmul.f32 %v2451_v42, %v2639_v0 }
 0x37b   : > { %v2647_v6 = vpop.f32.mrb[30].mxu0  ;;  %1765 = vmatprep.subr.bf16.mxu1 %v1270_v31  ;;  %v1340_v17 = vmul.f32 %v2441_v35, %v2643_v3 }
 0x37c   : > { %v1343_v63 = vmul.f32 %v2457_v46, %v2647_v6  ;;  %v2653_v11 = vpop.f32.mrb[31].mxu0 }
 0x37d   : > { %v1341_v48 = vmul.f32 %v2445_v38, %v2653_v11 }
 0x37e   : > { %v1345_v1 = vpack.c.bf16 %v1343_v63, %v1342_v55  ;;  %1766 = vmatpush3.bf16.msra.mxu1 %v1270_v31 }
 0x37f   : > { %v1344_v25 = vpack.c.bf16 %v1341_v48, %v1340_v17 }
 0x381   : > { %1768 = vmatmul.mubr.msk.bf16.vlgmr.msra.gmra.mrb[24].mxu1 %vm284_vm0, %v2455_v43  ;;  %1771 = vmatprep.subr.bf16.mxu1 %v1344_v25  ;;  %v1174_v43 = vmul.f32 %v2589_v45, %v2481_v32 }
 0x382   : > { %1772 = vmatpush3.bf16.msra.mxu1 %v1344_v25  ;;  %1775 = vmatprep.mubr.msk.bf16.mxu1 %vm284_vm0, %v2334_v26  ;;  %v1177_v26 = vmul.f32 %v2591_v5, %v2485_v33  ;;  %v1249_v5 = vmul.f32 %v2605_v10, %v2509_v30  ;;  %v1252_v25 = vmul.f32 %v2607_v51, %v2513_v36 }
 0x383   : > { %1773 = vmatprep.subr.bf16.mxu1 %v1345_v1 }
 0x386   : > { %1774 = vmatpush3.bf16.msra.mxu1 %v1345_v1 }
 0x389   : > { %1776 = vmatmul.mubr.msk.bf16.vlgmr.msra.gmra.mrb[28].mxu1 %vm284_vm0, %v2469_v27 }
 0x444   : > { %v1753_v49 = vpop.f32.mrb[16].mxu1 }
 0x445   : > { %v1172_v2 = vmul.f32 %v2395_v29, %v1753_v49  ;;  %v1155_v15 = vpop.f32.mrb[17].mxu1 }
 0x446   : > { %v1170_v60 = vmul.f32 %v2387_v12, %v1155_v15  ;;  %v1754_v31 = vpop.f32.mrb[18].mxu1 }
 0x447   : > { %v1180_v7 = vadd.f32 %v1176_v39, %v1172_v2  ;;  %v1173_v27 = vmul.f32 %v2397_v34, %v1754_v31  ;;  %v1158_v55 = vpop.f32.mrb[19].mxu1 }
 0x448   : > { %v1178_v41 = vadd.f32 %v1174_v43, %v1170_v60  ;;  %v1171_v29 = vmul.f32 %v2389_v14, %v1158_v55 }
 0x449   : > { %v1184_v63 = vmax.f32 %v1180_v7, 0.0  ;;  %v1181_v17 = vadd.f32 %v1177_v26, %v1173_v27  ;;  %v1327_v26 = vmul.f32 %v2627_v22, %v2541_v18 }
 0x44a   : > { %v1182_v48 = vmax.f32 %v1178_v41, 0.0  ;;  %v1179_v32 = vadd.f32 %v1175_v24, %v1171_v29 }
 0x44b   : > { %1188 = vst [vmem:[%s2678_s18 + $0x10] sm:$0xff] %v1184_v63  ;;  %v1185_v12 = vmax.f32 %v1181_v17, 0.0  ;;  %v1402_v17 = vmul.f32 %v2647_v6, %v2569_v54 }
 0x44c   : > { %1186 = vst [vmem:[%s2678_s18] sm:$0xff] %v1182_v48  ;;  %v1183_v34 = vmax.f32 %v1179_v32, 0.0  ;;  %v1761_v33 = vpop.f32.mrb[20].mxu1 }
 0x44d   : > { %1189 = vst [vmem:[%s2678_s18 + $0x18] sm:$0xff] %v1185_v12  ;;  %v1247_v14 = vmul.f32 %v2411_v61, %v1761_v33  ;;  %v1230_v45 = vpop.f32.mrb[21].mxu1  ;;  %v1250_v61 = vmul.f32 %v2613_v47, %v2517_v50 }
 0x44e   : > { %1187 = vst [vmem:[%s2678_s18 + $0x8] sm:$0xff] %v1183_v34  ;;  %v1245_v62 = vmul.f32 %v2403_v40, %v1230_v45  ;;  %v1762_v1 = vpop.f32.mrb[22].mxu1 }
 0x44f   : > { %v1255_v49 = vadd.f32 %v1251_v37, %v1247_v14  ;;  %v1248_v16 = vmul.f32 %v2413_v4, %v1762_v1  ;;  %v1233_v9 = vpop.f32.mrb[23].mxu1  ;;  %v1326_v4 = vmul.f32 %v2619_v58, %v2533_v52 }
 0x450   : > { %v1253_v39 = vadd.f32 %v1249_v5, %v1245_v62  ;;  %v1246_v30 = vmul.f32 %v2405_v44, %v1233_v9  ;;  %v1324_v44 = vmul.f32 %v2623_v20, %v2537_v53 }
 0x451   : > { %v1259_v10 = vmax.f32 %v1255_v49, 0.0  ;;  %v1256_v2 = vadd.f32 %v1252_v25, %v1248_v16 }
 0x452   : > { %v1257_v15 = vmax.f32 %v1253_v39, 0.0  ;;  %v1254_v40 = vadd.f32 %v1250_v61, %v1246_v30 }
 0x453   : > { %1263 = vst [vmem:[%s2678_s18 + $0x30] sm:$0xff] %v1259_v10  ;;  %v1260_v43 = vmax.f32 %v1256_v2, 0.0 }
 0x454   : > { %1261 = vst [vmem:[%s2678_s18 + $0x20] sm:$0xff] %v1257_v15  ;;  %v1258_v36 = vmax.f32 %v1254_v40, 0.0  ;;  %v1769_v51 = vpop.f32.mrb[24].mxu1 }
 0x455   : > { %1264 = vst [vmem:[%s2678_s18 + $0x38] sm:$0xff] %v1260_v43  ;;  %v1322_v60 = vmul.f32 %v2431_v23, %v1769_v51  ;;  %v1305_v50 = vpop.f32.mrb[25].mxu1  ;;  %v1325_v23 = vmul.f32 %v2633_v59, %v2545_v8 }
 0x456   : > { %1262 = vst [vmem:[%s2678_s18 + $0x28] sm:$0xff] %v1258_v36  ;;  %v1320_v47 = vmul.f32 %v2421_v13, %v1305_v50  ;;  %v1770_v31 = vpop.f32.mrb[26].mxu1 }
 0x457   : > { %v1330_v7 = vadd.f32 %v1326_v4, %v1322_v60  ;;  %v1323_v52 = vmul.f32 %v2433_v28, %v1770_v31  ;;  %v1308_v58 = vpop.f32.mrb[27].mxu1  ;;  %v1401_v28 = vmul.f32 %v2639_v0, %v2561_v56 }
 0x458   : > { %v1328_v27 = vadd.f32 %v1324_v44, %v1320_v47  ;;  %v1321_v53 = vmul.f32 %v2425_v19, %v1308_v58  ;;  %v1399_v19 = vmul.f32 %v2643_v3, %v2565_v57 }
 0x459   : > { %v1334_v20 = vmax.f32 %v1330_v7, 0.0  ;;  %v1331_v55 = vadd.f32 %v1327_v26, %v1323_v52 }
 0x45a   : > { %v1332_v24 = vmax.f32 %v1328_v27, 0.0  ;;  %v1329_v13 = vadd.f32 %v1325_v23, %v1321_v53 }
 0x45b   : > { %1338 = vst [vmem:[%s2678_s18 + $0x50] sm:$0xff] %v1334_v20  ;;  %v1335_v41 = vmax.f32 %v1331_v55, 0.0 }
 0x45c   : > { %1336 = vst [vmem:[%s2678_s18 + $0x40] sm:$0xff] %v1332_v24  ;;  %v1333_v18 = vmax.f32 %v1329_v13, 0.0  ;;  %v1777_v22 = vpop.f32.mrb[28].mxu1 }
 0x45d   : > { %1339 = vst [vmem:[%s2678_s18 + $0x58] sm:$0xff] %v1335_v41  ;;  %v1397_v8 = vmul.f32 %v2451_v42, %v1777_v22  ;;  %v1380_v59 = vpop.f32.mrb[29].mxu1  ;;  %v1400_v42 = vmul.f32 %v2653_v11, %v2573_v21 }
 0x45e   : > { %1337 = vst [vmem:[%s2678_s18 + $0x48] sm:$0xff] %v1333_v18  ;;  %v1395_v29 = vmul.f32 %v2441_v35, %v1380_v59  ;;  %v1778_v63 = vpop.f32.mrb[30].mxu1 }
 0x45f   : > { %v1405_v48 = vadd.f32 %v1401_v28, %v1397_v8  ;;  %v1398_v56 = vmul.f32 %v2457_v46, %v1778_v63  ;;  %v1383_v0 = vpop.f32.mrb[31].mxu1 }
 0x460   : > { %v1403_v32 = vadd.f32 %v1399_v19, %v1395_v29  ;;  %v1396_v57 = vmul.f32 %v2445_v38, %v1383_v0 }
 0x461   : > { %v1409_v35 = vmax.f32 %v1405_v48, 0.0  ;;  %v1406_v3 = vadd.f32 %v1402_v17, %v1398_v56 }
 0x462   : > { %v1407_v54 = vmax.f32 %v1403_v32, 0.0  ;;  %v1404_v6 = vadd.f32 %v1400_v42, %v1396_v57 }
 0x463   : > { %1413 = vst [vmem:[%s2678_s18 + $0x70] sm:$0xff] %v1409_v35  ;;  %v1410_v12 = vmax.f32 %v1406_v3, 0.0 }
 0x464   : > { %1411 = vst [vmem:[%s2678_s18 + $0x60] sm:$0xff] %v1407_v54  ;;  %v1408_v38 = vmax.f32 %v1404_v6, 0.0 }
 0x465   : > { %1414 = vst [vmem:[%s2678_s18 + $0x78] sm:$0xff] %v1410_v12 }
 0x466   : > { %1412 = vst [vmem:[%s2678_s18 + $0x68] sm:$0xff] %v1408_v38 }
 0x467   : > { %1979 = shalt.err (!%p1976_p6)
}
 0x468   : > { %s1980_s22 = scalar_lea.hbm %s2734_s23, 2048  ;;  %s1984_s10 = scalar_lea.hbm %s2786_s3, 4096 }
 0x469   : > { %p1981_p8 = scmp.ne.s32.totalorder %s2734_s23, %s1980_s22  ;;  %p1985_p4 = scmp.lt.u32.totalorder %s2734_s23, %s2786_s3 }
 0x46a   : > { %p1986_p11 = scmp.lt.u32.totalorder %s1984_s10, %s1980_s22  ;;  %p1988_p3 = scmp.lt.u32.totalorder %s1980_s22, %s2734_s23 }
 0x46b   : > { %p1982_p10 = pnand %p1981_p8, %p2164_p12 }
 0x46c   : > { %p1987_p13 = por %p1986_p11, %p1985_p4 }
 0x46d   : > { %p1983_p0 = pneg %p1982_p10 }
 0x46e   : > { %p1989_p7 = por %p1988_p3, %p1987_p13 }
 0x470   : > { %p1990_p9 = pnand %p1989_p7, %p1983_p0 }
 0x472   : > { %1993 = shalt.err (!%p1990_p9)
}
 0x473   : > { %s2048_s20 = smov 128   ;;  %s2049_s7 = smov 8  }
 0x474   : > { %1787 = dma.vmem_to_hbm [thread:$0]  (%p2164_p12), %s2736_s29, 2048, %s2734_s23, %s1416_s16, %s2048_s20, %s2048_s20, %s2049_s7  }
 0x475 PF: > { %s1444_s9 = sand.u32 1, %s2028_s12   ;;  %p2811_p1 = scmp.ne.s32.totalorder %s2797_s19, 0 }
 0x476   : > { %p2812_p5 = scmp.ge.s32.totalorder %s2040_s15, 2  ;;  %s1445_s18 = scalar_lea.sflag [#allocation4], %s1444_s9 }
 0x478   : > { %p1801_p2 = pnand %p2812_p5, %p2811_p1 }
 0x47a   : > { %2023 = dma.done.wait (!%p1801_p2), %s1445_s18, 2048  }
 0x47b   : > { %2025 = vsyncadd (!%p1801_p2), %s1445_s18, 4294965248  ;;  %p19_p6 = scmp.ge.s32.totalorder %s2126_s24, 4   ;;  %s2813_s12 = smov %s2032_s13 }
 0x47c   : > { %s2814_s13 = smov %s2036_s14  ;;  %s2815_s14 = smov %s2160_s17 }
 0x47d   : > { %s2816_s15 = smov %s2126_s24  ;;  %21 = sbr.rel (!%p19_p6) target bundleno = 10 (0xa), region = 98 }
 0x484   :  { %1450 = vsyncpa [#allocation3], 1 }
 0x485   :  { %1452 = vsyncpa [#allocation3 + $0x1], 1 }
 0x486   :  { %1453 = vsyncpa [#allocation6], 1 }
 0x487   :  { %1455 = vsyncpa [#allocation6 + $0x1], 1 }
 0x488   :  { %1456 = vsyncpa [#allocation4], 1 }
 0x489   :  { %1458 = vsyncpa [#allocation4 + $0x1], 1 }

</bundles_post_ra>
